<compile_context>
chip_gen: v7x
topology: tpu7x:2x2x1
jax: 0.10.0
libtpu: 0.0.40
codegen_flags: <defaults>
</compile_context>

<pallas_src>
import functools

import jax
import jax.numpy as jnp
from jax import lax
from jax.experimental import pallas as pl
from jax.experimental.pallas import tpu as pltpu

# Hyperparameters (module defaults shrunk to small test sizes).
OBJECT_DIM = 3     # conv in-channels
HIDDEN_DIM = 32    # conv out-channels (module default is 100; small for test)
OUTCOME_DIM = 3
ROW_COUNT = 8      # env.ROW_COUNT
COL_COUNT = 8      # env.COLUMN_COUNT
BATCH = 2
KH = KW = 3
BN_EPS = 1e-5

# MXU operand dtype.  Use jnp.bfloat16 on v6e/v7x at production sizes
# (accumulation stays f32 via preferred_element_type); f32 here keeps exact
# parity with the f32 PyTorch module for the correctness check.
MM_DTYPE = jnp.float32

_VMEM = pl.BlockSpec(memory_space=pltpu.MemorySpace.VMEM)


# ---------------------------------------------------------------------------
# Fused kernel: Conv2d(3x3, pad=1) + BatchNorm2d (batch stats) + Sigmoid
#               + Linear + Sigmoid, all on VMEM-resident data.
# ---------------------------------------------------------------------------
def fused_forward_kernel(x_ref, w1_ref, b1_ref, gamma_ref, beta_ref,
                         w2_ref, b2_ref, mask_ref, out_ref,
                         *, batch, wp, span, inv_count):
    """Shapes:
      x_ref:    (batch, C, lanes)   zero-padded, flattened (H+2, W+2) grid
      w1_ref:   (KH*KW, HID, C)     conv weight, one (HID, C) slab per tap
      b1_ref / gamma_ref / beta_ref: (HID, 1)
      w2_ref:   (OUT, HID, span)    Linear weight scattered onto padded grid
      b2_ref:   (OUT, 1)
      mask_ref: (1, span)           1.0 at valid output positions, 0.0 at pad
      out_ref:  (OUT, batch)        transposed result (wrapper transposes back)
    """
    hid = w1_ref.shape[1]
    b1 = b1_ref[...]                                      # (HID, 1)
    mask = mask_ref[...]                                  # (1, span)

    # ---- Stage 1: conv as 9 shifted K=C matmuls per sample, producing the
    # lane-dense (HID, span) orientation; single-pass masked BN statistics.
    convs = []
    s1 = jnp.zeros((hid, 1), jnp.float32)
    s2 = jnp.zeros((hid, 1), jnp.float32)
    for n in range(batch):
        acc = jnp.zeros((hid, span), jnp.float32)
        for t in range(KH * KW):
            off = (t // KW) * wp + (t % KW)               # tap shift on flat grid
            xs = x_ref[n, :, off:off + span]              # (C, span) static slice
            acc = acc + jnp.dot(w1_ref[t].astype(MM_DTYPE),
                                xs.astype(MM_DTYPE),
                                preferred_element_type=jnp.float32)
        conv_n = acc + b1                                 # (HID, span)
        cm = conv_n * mask
        s1 = s1 + jnp.sum(cm, axis=1, keepdims=True)
        s2 = s2 + jnp.sum(conv_n * cm, axis=1, keepdims=True)
        convs.append(conv_n)

    mean = s1 * inv_count                                 # (HID, 1)
    # Biased batch variance (training-mode BatchNorm); clamp for stability.
    var = jnp.maximum(s2 * inv_count - mean * mean, 0.0)
    scale = gamma_ref[...] * lax.rsqrt(var + BN_EPS)      # rsqrt on the EUP
    shift = beta_ref[...] - mean * scale
    # TODO(synk): running_mean/running_var buffer updates (training-mode side
    # effect of BatchNorm2d) are not reproduced; only the activations are.

    # ---- Stage 2: sigmoid + Linear + sigmoid.  The hidden activation never
    # leaves the kernel; pad positions have zero weight in w2, so no gather.
    w2 = w2_ref[...]                                      # (OUT, HID, span)
    b2 = b2_ref[...]                                      # (OUT, 1)
    for n in range(batch):
        h_n = jax.nn.sigmoid(convs[n] * scale + shift)    # (HID, span)
        prod = w2 * h_n[None, :, :]                       # (OUT, HID, span)
        logits = jnp.sum(jnp.sum(prod, axis=2), axis=1, keepdims=True) + b2
        out_ref[:, n:n + 1] = jax.nn.sigmoid(logits)      # (OUT, 1) column


# ---------------------------------------------------------------------------
# One-time parameter layout preparation (hoisted out of the forward path).
# ---------------------------------------------------------------------------
def prepare_params(params, row=ROW_COUNT, col=COL_COUNT):
    conv_w, conv_b, bn_gamma, bn_beta, lin_w, lin_b = params
    hid, cin, kh, kw = conv_w.shape
    out_dim = lin_w.shape[0]
    hp, wp = row + 2, col + 2
    span = hp * wp

    # (HID, C, kh, kw) -> (kh*kw, HID, C): one MXU weight slab per tap.
    w1s = jnp.transpose(conv_w, (2, 3, 0, 1)).reshape(kh * kw, hid, cin)
    b1 = conv_b.reshape(hid, 1)
    gamma = bn_gamma.reshape(hid, 1)
    beta = bn_beta.reshape(hid, 1)

    # PyTorch flatten order is (c, h, w); scatter onto the padded-grid flat
    # index h*wp + w with zeros at pad positions (so invalid lanes add 0).
    w2 = lin_w.reshape(out_dim, hid, row, col)
    w2 = jnp.pad(w2, ((0, 0), (0, 0), (0, hp - row), (0, wp - col)))
    w2 = w2.reshape(out_dim, hid, span)
    b2 = lin_b.reshape(out_dim, 1)

    mask = jnp.pad(jnp.ones((row, col), jnp.float32),
                   ((0, hp - row), (0, wp - col))).reshape(1, span)
    return (w1s, b1, gamma, beta, w2, b2, mask)


@jax.jit
def neural_net_threshold_forward(x, prep):
    """x: (N, OBJECT_DIM, ROW, COL) float32 NCHW -> (N, OUTCOME_DIM)."""
    w1s, b1, gamma, beta, w2, b2, mask = prep
    n, c, h, w = x.shape
    hp, wp = h + 2, w + 2
    span = hp * wp
    max_shift = (KH - 1) * wp + (KW - 1)
    lanes = ((span + max_shift + 127) // 128) * 128

    # conv padding=1 plus a zero lane tail so every shifted slice in the
    # kernel is in-bounds and finite.  Lowers to one small XLA fusion.
    xflat = jnp.pad(x, ((0, 0), (0, 0), (1, 1), (1, 1))).reshape(n, c, span)
    xflat = jnp.pad(xflat, ((0, 0), (0, 0), (0, lanes - span)))

    out_dim = w2.shape[0]
    kernel = functools.partial(
        fused_forward_kernel, batch=n, wp=wp, span=span,
        inv_count=1.0 / float(n * h * w))

    # Single fused, gridless pallas_call: the whole problem fits in VMEM.
    # TODO(synk): at production sizes (hidden_dim=100, large batch) add a grid
    # over rows with dimension_semantics=("parallel", ...) to use both v7x
    # TensorCores, with tiles sized for v7x's smaller (64 MiB) VMEM.
    out_t = pl.pallas_call(
        kernel,
        out_shape=jax.ShapeDtypeStruct((out_dim, n), jnp.float32),
        in_specs=[_VMEM] * 8,
        out_specs=_VMEM,
    )(xflat, w1s, b1, gamma, beta, w2, b2, mask)
    return out_t.T                                        # (N, OUT)


# ---------------------------------------------------------------------------
# Pure-JAX reference (mirrors the PyTorch forward) for a correctness check.
# ---------------------------------------------------------------------------
def reference_forward(x, params):
    conv_w, conv_b, bn_gamma, bn_beta, lin_w, lin_b = params
    hid = conv_w.shape[0]
    conv = lax.conv_general_dilated(
        x, conv_w, window_strides=(1, 1), padding=((1, 1), (1, 1)),
        dimension_numbers=("NCHW", "OIHW", "NCHW"))
    conv = conv + conv_b.reshape(1, hid, 1, 1)
    mean = jnp.mean(conv, axis=(0, 2, 3), keepdims=True)
    var = jnp.mean((conv - mean) ** 2, axis=(0, 2, 3), keepdims=True)
    h = (conv - mean) * lax.rsqrt(var + BN_EPS)
    h = h * bn_gamma.reshape(1, hid, 1, 1) + bn_beta.reshape(1, hid, 1, 1)
    h = jax.nn.sigmoid(h)
    flat = h.reshape(h.shape[0], -1)                      # (N, HID*H*W)
    return jax.nn.sigmoid(flat @ lin_w.T + lin_b)


def init_params(key):
    k1, k2, k3, k4 = jax.random.split(key, 4)
    conv_w = 0.1 * jax.random.normal(
        k1, (HIDDEN_DIM, OBJECT_DIM, KH, KW), jnp.float32)
    conv_b = 0.05 * jax.random.normal(k2, (HIDDEN_DIM,), jnp.float32)
    bn_gamma = jnp.ones((HIDDEN_DIM,), jnp.float32)
    bn_beta = jnp.zeros((HIDDEN_DIM,), jnp.float32)
    lin_w = 0.05 * jax.random.normal(
        k3, (OUTCOME_DIM, HIDDEN_DIM * ROW_COUNT * COL_COUNT), jnp.float32)
    lin_b = 0.05 * jax.random.normal(k4, (OUTCOME_DIM,), jnp.float32)
    return (conv_w, conv_b, bn_gamma, bn_beta, lin_w, lin_b)


if __name__ == "__main__":
    key = jax.random.PRNGKey(0)
    kx, kp = jax.random.split(key)
    x = jax.random.normal(kx, (BATCH, OBJECT_DIM, ROW_COUNT, COL_COUNT),
                          jnp.float32)
    params = init_params(kp)
    prep = prepare_params(params)                         # one-time layout prep

    out = neural_net_threshold_forward(x, prep)
    out = jax.block_until_ready(out)

    ref = jax.block_until_ready(reference_forward(x, params))
    assert out.shape == (BATCH, OUTCOME_DIM)
    assert jnp.allclose(out, ref, rtol=1e-3, atol=1e-4), (out, ref)

    print("KERNEL_OK")
</pallas_src>

<mosaic_0001>
module attributes {stable_mosaic.version = 11 : i64} {
  func.func @fused_forward_kernel(%arg0: memref<2x3x128xf32, #tpu.memory_space<vmem>>, %arg1: memref<9x32x3xf32, #tpu.memory_space<vmem>>, %arg2: memref<32x1xf32, #tpu.memory_space<vmem>>, %arg3: memref<32x1xf32, #tpu.memory_space<vmem>>, %arg4: memref<32x1xf32, #tpu.memory_space<vmem>>, %arg5: memref<3x32x100xf32, #tpu.memory_space<vmem>>, %arg6: memref<3x1xf32, #tpu.memory_space<vmem>>, %arg7: memref<1x100xf32, #tpu.memory_space<vmem>>, %arg8: memref<3x2xf32, #tpu.memory_space<vmem>>) attributes {dimension_semantics = [], scalar_prefetch = 0 : i64, scratch_operands = 0 : i64, tpu.core_type = #tpu.core_type<tc>} {
    %c0 = arith.constant 0 : index
    %c0_0 = arith.constant 0 : index
    %0 = vector.load %arg2[%c0, %c0_0] : memref<32x1xf32, #tpu.memory_space<vmem>>, vector<32x1xf32>
    %c0_1 = arith.constant 0 : index
    %c0_2 = arith.constant 0 : index
    %1 = vector.load %arg7[%c0_1, %c0_2] : memref<1x100xf32, #tpu.memory_space<vmem>>, vector<1x100xf32>
    %cst = arith.constant 0.000000e+00 : f32
    %2 = vector.broadcast %cst : f32 to vector<32x1xf32>
    %cst_3 = arith.constant 0.000000e+00 : f32
    %3 = vector.broadcast %cst_3 : f32 to vector<32x1xf32>
    %cst_4 = arith.constant 0.000000e+00 : f32
    %4 = vector.broadcast %cst_4 : f32 to vector<32x100xf32>
    %c0_5 = arith.constant 0 : index
    %c0_6 = arith.constant 0 : index
    %c0_7 = arith.constant 0 : index
    %5 = vector.load %arg0[%c0_5, %c0_6, %c0_7] : memref<2x3x128xf32, #tpu.memory_space<vmem>>, vector<1x3x100xf32>
    %6 = vector.shape_cast %5 : vector<1x3x100xf32> to vector<3x100xf32>
    %c0_8 = arith.constant 0 : index
    %c0_9 = arith.constant 0 : index
    %c0_10 = arith.constant 0 : index
    %7 = vector.load %arg1[%c0_8, %c0_9, %c0_10] : memref<9x32x3xf32, #tpu.memory_space<vmem>>, vector<1x32x3xf32>
    %8 = vector.shape_cast %7 : vector<1x32x3xf32> to vector<32x3xf32>
    %cst_11 = arith.constant dense<0.000000e+00> : vector<32x100xf32>
    %9 = tpu.matmul %8, %6, %cst_11 {dimension_numbers = #tpu.dot_dimension_numbers<[1], [0], [0], [1], [0, 0, 1, 1], [], []>} : vector<32x3xf32>, vector<3x100xf32>, vector<32x100xf32> -> vector<32x100xf32>
    %10 = arith.addf %4, %9 : vector<32x100xf32>
    %c0_12 = arith.constant 0 : index
    %c0_13 = arith.constant 0 : index
    %c1 = arith.constant 1 : index
    %11 = vector.load %arg0[%c0_12, %c0_13, %c1] : memref<2x3x128xf32, #tpu.memory_space<vmem>>, vector<1x3x100xf32>
    %12 = vector.shape_cast %11 : vector<1x3x100xf32> to vector<3x100xf32>
    %c1_14 = arith.constant 1 : index
    %c0_15 = arith.constant 0 : index
    %c0_16 = arith.constant 0 : index
    %13 = vector.load %arg1[%c1_14, %c0_15, %c0_16] : memref<9x32x3xf32, #tpu.memory_space<vmem>>, vector<1x32x3xf32>
    %14 = vector.shape_cast %13 : vector<1x32x3xf32> to vector<32x3xf32>
    %cst_17 = arith.constant dense<0.000000e+00> : vector<32x100xf32>
    %15 = tpu.matmul %14, %12, %cst_17 {dimension_numbers = #tpu.dot_dimension_numbers<[1], [0], [0], [1], [0, 0, 1, 1], [], []>} : vector<32x3xf32>, vector<3x100xf32>, vector<32x100xf32> -> vector<32x100xf32>
    %16 = arith.addf %10, %15 : vector<32x100xf32>
    %c0_18 = arith.constant 0 : index
    %c0_19 = arith.constant 0 : index
    %c2 = arith.constant 2 : index
    %17 = vector.load %arg0[%c0_18, %c0_19, %c2] : memref<2x3x128xf32, #tpu.memory_space<vmem>>, vector<1x3x100xf32>
    %18 = vector.shape_cast %17 : vector<1x3x100xf32> to vector<3x100xf32>
    %c2_20 = arith.constant 2 : index
    %c0_21 = arith.constant 0 : index
    %c0_22 = arith.constant 0 : index
    %19 = vector.load %arg1[%c2_20, %c0_21, %c0_22] : memref<9x32x3xf32, #tpu.memory_space<vmem>>, vector<1x32x3xf32>
    %20 = vector.shape_cast %19 : vector<1x32x3xf32> to vector<32x3xf32>
    %cst_23 = arith.constant dense<0.000000e+00> : vector<32x100xf32>
    %21 = tpu.matmul %20, %18, %cst_23 {dimension_numbers = #tpu.dot_dimension_numbers<[1], [0], [0], [1], [0, 0, 1, 1], [], []>} : vector<32x3xf32>, vector<3x100xf32>, vector<32x100xf32> -> vector<32x100xf32>
    %22 = arith.addf %16, %21 : vector<32x100xf32>
    %c0_24 = arith.constant 0 : index
    %c0_25 = arith.constant 0 : index
    %c10 = arith.constant 10 : index
    %23 = vector.load %arg0[%c0_24, %c0_25, %c10] : memref<2x3x128xf32, #tpu.memory_space<vmem>>, vector<1x3x100xf32>
    %24 = vector.shape_cast %23 : vector<1x3x100xf32> to vector<3x100xf32>
    %c3 = arith.constant 3 : index
    %c0_26 = arith.constant 0 : index
    %c0_27 = arith.constant 0 : index
    %25 = vector.load %arg1[%c3, %c0_26, %c0_27] : memref<9x32x3xf32, #tpu.memory_space<vmem>>, vector<1x32x3xf32>
    %26 = vector.shape_cast %25 : vector<1x32x3xf32> to vector<32x3xf32>
    %cst_28 = arith.constant dense<0.000000e+00> : vector<32x100xf32>
    %27 = tpu.matmul %26, %24, %cst_28 {dimension_numbers = #tpu.dot_dimension_numbers<[1], [0], [0], [1], [0, 0, 1, 1], [], []>} : vector<32x3xf32>, vector<3x100xf32>, vector<32x100xf32> -> vector<32x100xf32>
    %28 = arith.addf %22, %27 : vector<32x100xf32>
    %c0_29 = arith.constant 0 : index
    %c0_30 = arith.constant 0 : index
    %c11 = arith.constant 11 : index
    %29 = vector.load %arg0[%c0_29, %c0_30, %c11] : memref<2x3x128xf32, #tpu.memory_space<vmem>>, vector<1x3x100xf32>
    %30 = vector.shape_cast %29 : vector<1x3x100xf32> to vector<3x100xf32>
    %c4 = arith.constant 4 : index
    %c0_31 = arith.constant 0 : index
    %c0_32 = arith.constant 0 : index
    %31 = vector.load %arg1[%c4, %c0_31, %c0_32] : memref<9x32x3xf32, #tpu.memory_space<vmem>>, vector<1x32x3xf32>
    %32 = vector.shape_cast %31 : vector<1x32x3xf32> to vector<32x3xf32>
    %cst_33 = arith.constant dense<0.000000e+00> : vector<32x100xf32>
    %33 = tpu.matmul %32, %30, %cst_33 {dimension_numbers = #tpu.dot_dimension_numbers<[1], [0], [0], [1], [0, 0, 1, 1], [], []>} : vector<32x3xf32>, vector<3x100xf32>, vector<32x100xf32> -> vector<32x100xf32>
    %34 = arith.addf %28, %33 : vector<32x100xf32>
    %c0_34 = arith.constant 0 : index
    %c0_35 = arith.constant 0 : index
    %c12 = arith.constant 12 : index
    %35 = vector.load %arg0[%c0_34, %c0_35, %c12] : memref<2x3x128xf32, #tpu.memory_space<vmem>>, vector<1x3x100xf32>
    %36 = vector.shape_cast %35 : vector<1x3x100xf32> to vector<3x100xf32>
    %c5 = arith.constant 5 : index
    %c0_36 = arith.constant 0 : index
    %c0_37 = arith.constant 0 : index
    %37 = vector.load %arg1[%c5, %c0_36, %c0_37] : memref<9x32x3xf32, #tpu.memory_space<vmem>>, vector<1x32x3xf32>
    %38 = vector.shape_cast %37 : vector<1x32x3xf32> to vector<32x3xf32>
    %cst_38 = arith.constant dense<0.000000e+00> : vector<32x100xf32>
    %39 = tpu.matmul %38, %36, %cst_38 {dimension_numbers = #tpu.dot_dimension_numbers<[1], [0], [0], [1], [0, 0, 1, 1], [], []>} : vector<32x3xf32>, vector<3x100xf32>, vector<32x100xf32> -> vector<32x100xf32>
    %40 = arith.addf %34, %39 : vector<32x100xf32>
    %c0_39 = arith.constant 0 : index
    %c0_40 = arith.constant 0 : index
    %c20 = arith.constant 20 : index
    %41 = vector.load %arg0[%c0_39, %c0_40, %c20] : memref<2x3x128xf32, #tpu.memory_space<vmem>>, vector<1x3x100xf32>
    %42 = vector.shape_cast %41 : vector<1x3x100xf32> to vector<3x100xf32>
    %c6 = arith.constant 6 : index
    %c0_41 = arith.constant 0 : index
    %c0_42 = arith.constant 0 : index
    %43 = vector.load %arg1[%c6, %c0_41, %c0_42] : memref<9x32x3xf32, #tpu.memory_space<vmem>>, vector<1x32x3xf32>
    %44 = vector.shape_cast %43 : vector<1x32x3xf32> to vector<32x3xf32>
    %cst_43 = arith.constant dense<0.000000e+00> : vector<32x100xf32>
    %45 = tpu.matmul %44, %42, %cst_43 {dimension_numbers = #tpu.dot_dimension_numbers<[1], [0], [0], [1], [0, 0, 1, 1], [], []>} : vector<32x3xf32>, vector<3x100xf32>, vector<32x100xf32> -> vector<32x100xf32>
    %46 = arith.addf %40, %45 : vector<32x100xf32>
    %c0_44 = arith.constant 0 : index
    %c0_45 = arith.constant 0 : index
    %c21 = arith.constant 21 : index
    %47 = vector.load %arg0[%c0_44, %c0_45, %c21] : memref<2x3x128xf32, #tpu.memory_space<vmem>>, vector<1x3x100xf32>
    %48 = vector.shape_cast %47 : vector<1x3x100xf32> to vector<3x100xf32>
    %c7 = arith.constant 7 : index
    %c0_46 = arith.constant 0 : index
    %c0_47 = arith.constant 0 : index
    %49 = vector.load %arg1[%c7, %c0_46, %c0_47] : memref<9x32x3xf32, #tpu.memory_space<vmem>>, vector<1x32x3xf32>
    %50 = vector.shape_cast %49 : vector<1x32x3xf32> to vector<32x3xf32>
    %cst_48 = arith.constant dense<0.000000e+00> : vector<32x100xf32>
    %51 = tpu.matmul %50, %48, %cst_48 {dimension_numbers = #tpu.dot_dimension_numbers<[1], [0], [0], [1], [0, 0, 1, 1], [], []>} : vector<32x3xf32>, vector<3x100xf32>, vector<32x100xf32> -> vector<32x100xf32>
    %52 = arith.addf %46, %51 : vector<32x100xf32>
    %c0_49 = arith.constant 0 : index
    %c0_50 = arith.constant 0 : index
    %c22 = arith.constant 22 : index
    %53 = vector.load %arg0[%c0_49, %c0_50, %c22] : memref<2x3x128xf32, #tpu.memory_space<vmem>>, vector<1x3x100xf32>
    %54 = vector.shape_cast %53 : vector<1x3x100xf32> to vector<3x100xf32>
    %c8 = arith.constant 8 : index
    %c0_51 = arith.constant 0 : index
    %c0_52 = arith.constant 0 : index
    %55 = vector.load %arg1[%c8, %c0_51, %c0_52] : memref<9x32x3xf32, #tpu.memory_space<vmem>>, vector<1x32x3xf32>
    %56 = vector.shape_cast %55 : vector<1x32x3xf32> to vector<32x3xf32>
    %cst_53 = arith.constant dense<0.000000e+00> : vector<32x100xf32>
    %57 = tpu.matmul %56, %54, %cst_53 {dimension_numbers = #tpu.dot_dimension_numbers<[1], [0], [0], [1], [0, 0, 1, 1], [], []>} : vector<32x3xf32>, vector<3x100xf32>, vector<32x100xf32> -> vector<32x100xf32>
    %58 = arith.addf %52, %57 : vector<32x100xf32>
    %59 = vector.broadcast %0 : vector<32x1xf32> to vector<32x100xf32>
    %60 = arith.addf %58, %59 : vector<32x100xf32>
    %61 = vector.broadcast %1 : vector<1x100xf32> to vector<32x100xf32>
    %62 = arith.mulf %60, %61 : vector<32x100xf32>
    %cst_54 = arith.constant dense<0.000000e+00> : vector<32xf32>
    %63 = vector.multi_reduction <add>, %62, %cst_54 [1] : vector<32x100xf32> to vector<32xf32>
    %64 = vector.shape_cast %63 : vector<32xf32> to vector<32x1xf32>
    %65 = arith.addf %2, %64 : vector<32x1xf32>
    %66 = arith.mulf %60, %62 : vector<32x100xf32>
    %cst_55 = arith.constant dense<0.000000e+00> : vector<32xf32>
    %67 = vector.multi_reduction <add>, %66, %cst_55 [1] : vector<32x100xf32> to vector<32xf32>
    %68 = vector.shape_cast %67 : vector<32xf32> to vector<32x1xf32>
    %69 = arith.addf %3, %68 : vector<32x1xf32>
    %cst_56 = arith.constant 0.000000e+00 : f32
    %70 = vector.broadcast %cst_56 : f32 to vector<32x100xf32>
    %c1_57 = arith.constant 1 : index
    %c0_58 = arith.constant 0 : index
    %c0_59 = arith.constant 0 : index
    %71 = vector.load %arg0[%c1_57, %c0_58, %c0_59] : memref<2x3x128xf32, #tpu.memory_space<vmem>>, vector<1x3x100xf32>
    %72 = vector.shape_cast %71 : vector<1x3x100xf32> to vector<3x100xf32>
    %c0_60 = arith.constant 0 : index
    %c0_61 = arith.constant 0 : index
    %c0_62 = arith.constant 0 : index
    %73 = vector.load %arg1[%c0_60, %c0_61, %c0_62] : memref<9x32x3xf32, #tpu.memory_space<vmem>>, vector<1x32x3xf32>
    %74 = vector.shape_cast %73 : vector<1x32x3xf32> to vector<32x3xf32>
    %cst_63 = arith.constant dense<0.000000e+00> : vector<32x100xf32>
    %75 = tpu.matmul %74, %72, %cst_63 {dimension_numbers = #tpu.dot_dimension_numbers<[1], [0], [0], [1], [0, 0, 1, 1], [], []>} : vector<32x3xf32>, vector<3x100xf32>, vector<32x100xf32> -> vector<32x100xf32>
    %76 = arith.addf %70, %75 : vector<32x100xf32>
    %c1_64 = arith.constant 1 : index
    %c0_65 = arith.constant 0 : index
    %c1_66 = arith.constant 1 : index
    %77 = vector.load %arg0[%c1_64, %c0_65, %c1_66] : memref<2x3x128xf32, #tpu.memory_space<vmem>>, vector<1x3x100xf32>
    %78 = vector.shape_cast %77 : vector<1x3x100xf32> to vector<3x100xf32>
    %c1_67 = arith.constant 1 : index
    %c0_68 = arith.constant 0 : index
    %c0_69 = arith.constant 0 : index
    %79 = vector.load %arg1[%c1_67, %c0_68, %c0_69] : memref<9x32x3xf32, #tpu.memory_space<vmem>>, vector<1x32x3xf32>
    %80 = vector.shape_cast %79 : vector<1x32x3xf32> to vector<32x3xf32>
    %cst_70 = arith.constant dense<0.000000e+00> : vector<32x100xf32>
    %81 = tpu.matmul %80, %78, %cst_70 {dimension_numbers = #tpu.dot_dimension_numbers<[1], [0], [0], [1], [0, 0, 1, 1], [], []>} : vector<32x3xf32>, vector<3x100xf32>, vector<32x100xf32> -> vector<32x100xf32>
    %82 = arith.addf %76, %81 : vector<32x100xf32>
    %c1_71 = arith.constant 1 : index
    %c0_72 = arith.constant 0 : index
    %c2_73 = arith.constant 2 : index
    %83 = vector.load %arg0[%c1_71, %c0_72, %c2_73] : memref<2x3x128xf32, #tpu.memory_space<vmem>>, vector<1x3x100xf32>
    %84 = vector.shape_cast %83 : vector<1x3x100xf32> to vector<3x100xf32>
    %c2_74 = arith.constant 2 : index
    %c0_75 = arith.constant 0 : index
    %c0_76 = arith.constant 0 : index
    %85 = vector.load %arg1[%c2_74, %c0_75, %c0_76] : memref<9x32x3xf32, #tpu.memory_space<vmem>>, vector<1x32x3xf32>
    %86 = vector.shape_cast %85 : vector<1x32x3xf32> to vector<32x3xf32>
    %cst_77 = arith.constant dense<0.000000e+00> : vector<32x100xf32>
    %87 = tpu.matmul %86, %84, %cst_77 {dimension_numbers = #tpu.dot_dimension_numbers<[1], [0], [0], [1], [0, 0, 1, 1], [], []>} : vector<32x3xf32>, vector<3x100xf32>, vector<32x100xf32> -> vector<32x100xf32>
    %88 = arith.addf %82, %87 : vector<32x100xf32>
    %c1_78 = arith.constant 1 : index
    %c0_79 = arith.constant 0 : index
    %c10_80 = arith.constant 10 : index
    %89 = vector.load %arg0[%c1_78, %c0_79, %c10_80] : memref<2x3x128xf32, #tpu.memory_space<vmem>>, vector<1x3x100xf32>
    %90 = vector.shape_cast %89 : vector<1x3x100xf32> to vector<3x100xf32>
    %c3_81 = arith.constant 3 : index
    %c0_82 = arith.constant 0 : index
    %c0_83 = arith.constant 0 : index
    %91 = vector.load %arg1[%c3_81, %c0_82, %c0_83] : memref<9x32x3xf32, #tpu.memory_space<vmem>>, vector<1x32x3xf32>
    %92 = vector.shape_cast %91 : vector<1x32x3xf32> to vector<32x3xf32>
    %cst_84 = arith.constant dense<0.000000e+00> : vector<32x100xf32>
    %93 = tpu.matmul %92, %90, %cst_84 {dimension_numbers = #tpu.dot_dimension_numbers<[1], [0], [0], [1], [0, 0, 1, 1], [], []>} : vector<32x3xf32>, vector<3x100xf32>, vector<32x100xf32> -> vector<32x100xf32>
    %94 = arith.addf %88, %93 : vector<32x100xf32>
    %c1_85 = arith.constant 1 : index
    %c0_86 = arith.constant 0 : index
    %c11_87 = arith.constant 11 : index
    %95 = vector.load %arg0[%c1_85, %c0_86, %c11_87] : memref<2x3x128xf32, #tpu.memory_space<vmem>>, vector<1x3x100xf32>
    %96 = vector.shape_cast %95 : vector<1x3x100xf32> to vector<3x100xf32>
    %c4_88 = arith.constant 4 : index
    %c0_89 = arith.constant 0 : index
    %c0_90 = arith.constant 0 : index
    %97 = vector.load %arg1[%c4_88, %c0_89, %c0_90] : memref<9x32x3xf32, #tpu.memory_space<vmem>>, vector<1x32x3xf32>
    %98 = vector.shape_cast %97 : vector<1x32x3xf32> to vector<32x3xf32>
    %cst_91 = arith.constant dense<0.000000e+00> : vector<32x100xf32>
    %99 = tpu.matmul %98, %96, %cst_91 {dimension_numbers = #tpu.dot_dimension_numbers<[1], [0], [0], [1], [0, 0, 1, 1], [], []>} : vector<32x3xf32>, vector<3x100xf32>, vector<32x100xf32> -> vector<32x100xf32>
    %100 = arith.addf %94, %99 : vector<32x100xf32>
    %c1_92 = arith.constant 1 : index
    %c0_93 = arith.constant 0 : index
    %c12_94 = arith.constant 12 : index
    %101 = vector.load %arg0[%c1_92, %c0_93, %c12_94] : memref<2x3x128xf32, #tpu.memory_space<vmem>>, vector<1x3x100xf32>
    %102 = vector.shape_cast %101 : vector<1x3x100xf32> to vector<3x100xf32>
    %c5_95 = arith.constant 5 : index
    %c0_96 = arith.constant 0 : index
    %c0_97 = arith.constant 0 : index
    %103 = vector.load %arg1[%c5_95, %c0_96, %c0_97] : memref<9x32x3xf32, #tpu.memory_space<vmem>>, vector<1x32x3xf32>
    %104 = vector.shape_cast %103 : vector<1x32x3xf32> to vector<32x3xf32>
    %cst_98 = arith.constant dense<0.000000e+00> : vector<32x100xf32>
    %105 = tpu.matmul %104, %102, %cst_98 {dimension_numbers = #tpu.dot_dimension_numbers<[1], [0], [0], [1], [0, 0, 1, 1], [], []>} : vector<32x3xf32>, vector<3x100xf32>, vector<32x100xf32> -> vector<32x100xf32>
    %106 = arith.addf %100, %105 : vector<32x100xf32>
    %c1_99 = arith.constant 1 : index
    %c0_100 = arith.constant 0 : index
    %c20_101 = arith.constant 20 : index
    %107 = vector.load %arg0[%c1_99, %c0_100, %c20_101] : memref<2x3x128xf32, #tpu.memory_space<vmem>>, vector<1x3x100xf32>
    %108 = vector.shape_cast %107 : vector<1x3x100xf32> to vector<3x100xf32>
    %c6_102 = arith.constant 6 : index
    %c0_103 = arith.constant 0 : index
    %c0_104 = arith.constant 0 : index
    %109 = vector.load %arg1[%c6_102, %c0_103, %c0_104] : memref<9x32x3xf32, #tpu.memory_space<vmem>>, vector<1x32x3xf32>
    %110 = vector.shape_cast %109 : vector<1x32x3xf32> to vector<32x3xf32>
    %cst_105 = arith.constant dense<0.000000e+00> : vector<32x100xf32>
    %111 = tpu.matmul %110, %108, %cst_105 {dimension_numbers = #tpu.dot_dimension_numbers<[1], [0], [0], [1], [0, 0, 1, 1], [], []>} : vector<32x3xf32>, vector<3x100xf32>, vector<32x100xf32> -> vector<32x100xf32>
    %112 = arith.addf %106, %111 : vector<32x100xf32>
    %c1_106 = arith.constant 1 : index
    %c0_107 = arith.constant 0 : index
    %c21_108 = arith.constant 21 : index
    %113 = vector.load %arg0[%c1_106, %c0_107, %c21_108] : memref<2x3x128xf32, #tpu.memory_space<vmem>>, vector<1x3x100xf32>
    %114 = vector.shape_cast %113 : vector<1x3x100xf32> to vector<3x100xf32>
    %c7_109 = arith.constant 7 : index
    %c0_110 = arith.constant 0 : index
    %c0_111 = arith.constant 0 : index
    %115 = vector.load %arg1[%c7_109, %c0_110, %c0_111] : memref<9x32x3xf32, #tpu.memory_space<vmem>>, vector<1x32x3xf32>
    %116 = vector.shape_cast %115 : vector<1x32x3xf32> to vector<32x3xf32>
    %cst_112 = arith.constant dense<0.000000e+00> : vector<32x100xf32>
    %117 = tpu.matmul %116, %114, %cst_112 {dimension_numbers = #tpu.dot_dimension_numbers<[1], [0], [0], [1], [0, 0, 1, 1], [], []>} : vector<32x3xf32>, vector<3x100xf32>, vector<32x100xf32> -> vector<32x100xf32>
    %118 = arith.addf %112, %117 : vector<32x100xf32>
    %c1_113 = arith.constant 1 : index
    %c0_114 = arith.constant 0 : index
    %c22_115 = arith.constant 22 : index
    %119 = vector.load %arg0[%c1_113, %c0_114, %c22_115] : memref<2x3x128xf32, #tpu.memory_space<vmem>>, vector<1x3x100xf32>
    %120 = vector.shape_cast %119 : vector<1x3x100xf32> to vector<3x100xf32>
    %c8_116 = arith.constant 8 : index
    %c0_117 = arith.constant 0 : index
    %c0_118 = arith.constant 0 : index
    %121 = vector.load %arg1[%c8_116, %c0_117, %c0_118] : memref<9x32x3xf32, #tpu.memory_space<vmem>>, vector<1x32x3xf32>
    %122 = vector.shape_cast %121 : vector<1x32x3xf32> to vector<32x3xf32>
    %cst_119 = arith.constant dense<0.000000e+00> : vector<32x100xf32>
    %123 = tpu.matmul %122, %120, %cst_119 {dimension_numbers = #tpu.dot_dimension_numbers<[1], [0], [0], [1], [0, 0, 1, 1], [], []>} : vector<32x3xf32>, vector<3x100xf32>, vector<32x100xf32> -> vector<32x100xf32>
    %124 = arith.addf %118, %123 : vector<32x100xf32>
    %125 = vector.broadcast %0 : vector<32x1xf32> to vector<32x100xf32>
    %126 = arith.addf %124, %125 : vector<32x100xf32>
    %127 = vector.broadcast %1 : vector<1x100xf32> to vector<32x100xf32>
    %128 = arith.mulf %126, %127 : vector<32x100xf32>
    %cst_120 = arith.constant dense<0.000000e+00> : vector<32xf32>
    %129 = vector.multi_reduction <add>, %128, %cst_120 [1] : vector<32x100xf32> to vector<32xf32>
    %130 = vector.shape_cast %129 : vector<32xf32> to vector<32x1xf32>
    %131 = arith.addf %65, %130 : vector<32x1xf32>
    %132 = arith.mulf %126, %128 : vector<32x100xf32>
    %cst_121 = arith.constant dense<0.000000e+00> : vector<32xf32>
    %133 = vector.multi_reduction <add>, %132, %cst_121 [1] : vector<32x100xf32> to vector<32xf32>
    %134 = vector.shape_cast %133 : vector<32xf32> to vector<32x1xf32>
    %135 = arith.addf %69, %134 : vector<32x1xf32>
    %cst_122 = arith.constant 7.812500e-03 : f32
    %136 = vector.broadcast %cst_122 : f32 to vector<32x1xf32>
    %137 = arith.mulf %131, %136 : vector<32x1xf32>
    %cst_123 = arith.constant 7.812500e-03 : f32
    %138 = vector.broadcast %cst_123 : f32 to vector<32x1xf32>
    %139 = arith.mulf %135, %138 : vector<32x1xf32>
    %140 = arith.mulf %137, %137 : vector<32x1xf32>
    %141 = arith.subf %139, %140 : vector<32x1xf32>
    %cst_124 = arith.constant 0.000000e+00 : f32
    %142 = vector.broadcast %cst_124 : f32 to vector<32x1xf32>
    %143 = arith.maximumf %141, %142 : vector<32x1xf32>
    %c0_125 = arith.constant 0 : index
    %c0_126 = arith.constant 0 : index
    %144 = vector.load %arg3[%c0_125, %c0_126] : memref<32x1xf32, #tpu.memory_space<vmem>>, vector<32x1xf32>
    %cst_127 = arith.constant 9.99999974E-6 : f32
    %145 = vector.broadcast %cst_127 : f32 to vector<32x1xf32>
    %146 = arith.addf %143, %145 : vector<32x1xf32>
    %147 = math.rsqrt %146 : vector<32x1xf32>
    %148 = arith.mulf %144, %147 : vector<32x1xf32>
    %c0_128 = arith.constant 0 : index
    %c0_129 = arith.constant 0 : index
    %149 = vector.load %arg4[%c0_128, %c0_129] : memref<32x1xf32, #tpu.memory_space<vmem>>, vector<32x1xf32>
    %150 = arith.mulf %137, %148 : vector<32x1xf32>
    %151 = arith.subf %149, %150 : vector<32x1xf32>
    %c0_130 = arith.constant 0 : index
    %c0_131 = arith.constant 0 : index
    %c0_132 = arith.constant 0 : index
    %152 = vector.load %arg5[%c0_130, %c0_131, %c0_132] : memref<3x32x100xf32, #tpu.memory_space<vmem>>, vector<3x32x100xf32>
    %c0_133 = arith.constant 0 : index
    %c0_134 = arith.constant 0 : index
    %153 = vector.load %arg6[%c0_133, %c0_134] : memref<3x1xf32, #tpu.memory_space<vmem>>, vector<3x1xf32>
    %154 = vector.broadcast %148 : vector<32x1xf32> to vector<32x100xf32>
    %155 = arith.mulf %60, %154 : vector<32x100xf32>
    %156 = vector.broadcast %151 : vector<32x1xf32> to vector<32x100xf32>
    %157 = arith.addf %155, %156 : vector<32x100xf32>
    %158 = arith.negf %157 : vector<32x100xf32>
    %159 = math.exp %158 : vector<32x100xf32>
    %cst_135 = arith.constant 1.000000e+00 : f32
    %160 = vector.broadcast %cst_135 : f32 to vector<32x100xf32>
    %161 = arith.addf %160, %159 : vector<32x100xf32>
    %162 = arith.divf %160, %161 : vector<32x100xf32>
    %163 = vector.shape_cast %162 : vector<32x100xf32> to vector<1x32x100xf32>
    %164 = vector.broadcast %163 : vector<1x32x100xf32> to vector<3x32x100xf32>
    %165 = arith.mulf %152, %164 : vector<3x32x100xf32>
    %cst_136 = arith.constant dense<0.000000e+00> : vector<3x32xf32>
    %166 = vector.multi_reduction <add>, %165, %cst_136 [2] : vector<3x32x100xf32> to vector<3x32xf32>
    %cst_137 = arith.constant dense<0.000000e+00> : vector<3xf32>
    %167 = vector.multi_reduction <add>, %166, %cst_137 [1] : vector<3x32xf32> to vector<3xf32>
    %168 = vector.shape_cast %167 : vector<3xf32> to vector<3x1xf32>
    %169 = arith.addf %168, %153 : vector<3x1xf32>
    %170 = arith.negf %169 : vector<3x1xf32>
    %171 = math.exp %170 : vector<3x1xf32>
    %cst_138 = arith.constant 1.000000e+00 : f32
    %172 = vector.broadcast %cst_138 : f32 to vector<3x1xf32>
    %173 = arith.addf %172, %171 : vector<3x1xf32>
    %174 = arith.divf %172, %173 : vector<3x1xf32>
    %c0_139 = arith.constant 0 : index
    %c0_140 = arith.constant 0 : index
    %175 = vector.load %arg8[%c0_139, %c0_140] : memref<3x2xf32, #tpu.memory_space<vmem>>, vector<3x1xf32>
    tpu.vector_store %arg8[%c0_139, %c0_140], %174 {strides = array<i32>} : memref<3x2xf32, #tpu.memory_space<vmem>>, vector<3x1xf32>,
    %176 = vector.broadcast %148 : vector<32x1xf32> to vector<32x100xf32>
    %177 = arith.mulf %126, %176 : vector<32x100xf32>
    %178 = vector.broadcast %151 : vector<32x1xf32> to vector<32x100xf32>
    %179 = arith.addf %177, %178 : vector<32x100xf32>
    %180 = arith.negf %179 : vector<32x100xf32>
    %181 = math.exp %180 : vector<32x100xf32>
    %cst_141 = arith.constant 1.000000e+00 : f32
    %182 = vector.broadcast %cst_141 : f32 to vector<32x100xf32>
    %183 = arith.addf %182, %181 : vector<32x100xf32>
    %184 = arith.divf %182, %183 : vector<32x100xf32>
    %185 = vector.shape_cast %184 : vector<32x100xf32> to vector<1x32x100xf32>
    %186 = vector.broadcast %185 : vector<1x32x100xf32> to vector<3x32x100xf32>
    %187 = arith.mulf %152, %186 : vector<3x32x100xf32>
    %cst_142 = arith.constant dense<0.000000e+00> : vector<3x32xf32>
    %188 = vector.multi_reduction <add>, %187, %cst_142 [2] : vector<3x32x100xf32> to vector<3x32xf32>
    %cst_143 = arith.constant dense<0.000000e+00> : vector<3xf32>
    %189 = vector.multi_reduction <add>, %188, %cst_143 [1] : vector<3x32xf32> to vector<3xf32>
    %190 = vector.shape_cast %189 : vector<3xf32> to vector<3x1xf32>
    %191 = arith.addf %190, %153 : vector<3x1xf32>
    %192 = arith.negf %191 : vector<3x1xf32>
    %193 = math.exp %192 : vector<3x1xf32>
    %cst_144 = arith.constant 1.000000e+00 : f32
    %194 = vector.broadcast %cst_144 : f32 to vector<3x1xf32>
    %195 = arith.addf %194, %193 : vector<3x1xf32>
    %196 = arith.divf %194, %195 : vector<3x1xf32>
    %c0_145 = arith.constant 0 : index
    %c1_146 = arith.constant 1 : index
    %197 = vector.load %arg8[%c0_145, %c1_146] : memref<3x2xf32, #tpu.memory_space<vmem>>, vector<3x1xf32>
    tpu.vector_store %arg8[%c0_145, %c1_146], %196 {strides = array<i32>} : memref<3x2xf32, #tpu.memory_space<vmem>>, vector<3x1xf32>,
    return
  }
}

</mosaic_0001>

<bundles_post_ra>
// kernel: neural_net_threshold_forward.1
= control target key start
LH: loop header
LB: loop body
LE: loop exit
PB: predicated region body
PF: predicated region fallthrough
CT: control target
= control target key end

     0   :  { %vm47_vm0 = vcmask 23552   ;;  %s2902_s29 = smov 127   ;;  %s2903_s30 = smov 126   ;;  %v2910_v3 = vmov 0   ;;  %vm60_vm1 = vcmask 1042432   ;;  %vm1051_vm2 = vcmask 818176   ;;  %s3420_s0 = inlined_call_operand.vmem [shape: f32[2,3,128], index: 0, kind: input, shape index: {}]   ;;  %s3421_s1 = inlined_call_operand.vmem [shape: f32[9,32,3], index: 1, kind: input, shape index: {}]   ;;  %s3422_s2 = inlined_call_operand.vmem [shape: f32[32,1], index: 2, kind: input, shape index: {}]   ;;  %s3423_s7 = inlined_call_operand.vmem [shape: f32[1,100], index: 7, kind: input, shape index: {}]   ;;  %s3424_s3 = inlined_call_operand.vmem [shape: f32[32,1], index: 3, kind: input, shape index: {}]   ;;  %s3425_s4 = inlined_call_operand.vmem [shape: f32[32,1], index: 4, kind: input, shape index: {}]   ;;  %s3426_s5 = inlined_call_operand.vmem [shape: f32[3,32,100], index: 5, kind: input, shape index: {}]   ;;  %s3427_s6 = inlined_call_operand.vmem [shape: f32[3,1], index: 6, kind: input, shape index: {}]   ;;  %s3428_s8 = inlined_call_operand.vmem [shape: f32[3,2], index: 8, kind: output, shape index: {}]  }
   0x1   :  { %v34_v0 = vld [vmem:[%s3420_s0] sm:$0x7]  ;;  %v2488_v2 = vld [vmem:[%s3420_s0 + $0x4] sm:$0x7]  ;;  %s2904_s13 = smov 118   ;;  %s2905_s14 = smov 117   ;;  %2853 = vset.pattern.permute.xlu1 %v2910_v3  ;;  %2852 = vset.pattern.permute.xlu0 %v2910_v3 }
   0x2   :  { %45 = vrot.lane.b32.xlu0 %v34_v0, %s2902_s29  ;;  %252 = vrot.lane.b32.xlu1 %v34_v0, %s2903_s30  ;;  %v2410_v1 = vld [vmem:[%s3421_s1 + $0x20] sm:$0xff]  ;;  %s2906_s15 = smov 116   ;;  %s2907_s16 = smov 108   ;;  %v30_v4 = vld [vmem:[%s3422_s2 + $0x8] sm:$0xff]  ;;  %vm2166_vm3 = vcmask 130112   ;;  %vm2173_vm4 = vcmask 195712  }
   0x3   :  { %2636 = vmatprep.mubr.msk.f32.mxu0 %vm47_vm0, %v2410_v1  ;;  %2708 = vmatprep.mubr.msk.f32.mxu1 %vm47_vm0, %v2410_v1  ;;  %s2908_s17 = smov 107   ;;  %s2909_s0 = smov 106   ;;  %v29_v5 = vld [vmem:[%s3422_s2] sm:$0xff]  ;;  %v32_v6 = vld [vmem:[%s3422_s2 + $0x18] sm:$0xff]  ;;  %v31_v7 = vld [vmem:[%s3422_s2 + $0x10] sm:$0xff]  ;;  %vm2180_vm5 = vcmask 261312  }
   0x4   :  { %v2411_v9 = vld [vmem:[%s3421_s1 + $0x28] sm:$0xff]  ;;  %v2412_v10 = vld [vmem:[%s3421_s1 + $0x30] sm:$0xff]  ;;  %v2413_v13 = vld [vmem:[%s3421_s1 + $0x38] sm:$0xff]  ;;  %vm2220_vm6 = vcmask 1041409   ;;  %vm2222_vm7 = vcmask 1042434   ;;  %vm2225_vm8 = vcmask 256000  }
   0x5   :  { %v35_v14 = vld [vmem:[%s3421_s1] sm:$0xff]  ;;  %v36_v16 = vld [vmem:[%s3421_s1 + $0x8] sm:$0xff]  ;;  %v37_v17 = vld [vmem:[%s3421_s1 + $0x10] sm:$0xff]  ;;  %vm2236_vm9 = vcmask 2048   ;;  %vm2404_vm10 = vcmask 10248  }
   0x6   :  { %1091 = vrot.lane.b32.xlu0 %v2488_v2, %s2902_s29  ;;  %1267 = vrot.lane.b32.xlu1 %v2488_v2, %s2903_s30  ;;  %v38_v19 = vld [vmem:[%s3421_s1 + $0x18] sm:$0xff]  ;;  %v2424_v20 = vld [vmem:[%s3421_s1 + $0x40] sm:$0xff] }
   0x7   :  { %v2425_v22 = vld [vmem:[%s3421_s1 + $0x48] sm:$0xff]  ;;  %v2426_v23 = vld [vmem:[%s3421_s1 + $0x50] sm:$0xff]  ;;  %v2427_v25 = vld [vmem:[%s3421_s1 + $0x58] sm:$0xff] }
   0x8   :  { %v2433_v26 = vld [vmem:[%s3421_s1 + $0x60] sm:$0xff]  ;;  %v2434_v28 = vld [vmem:[%s3421_s1 + $0x68] sm:$0xff]  ;;  %v2435_v29 = vld [vmem:[%s3421_s1 + $0x70] sm:$0xff] }
   0x9   :  { %v2436_v31 = vld [vmem:[%s3421_s1 + $0x78] sm:$0xff]  ;;  %v2442_v32 = vld [vmem:[%s3421_s1 + $0x80] sm:$0xff]  ;;  %v2443_v34 = vld [vmem:[%s3421_s1 + $0x88] sm:$0xff] }
   0xa   :  { %1360 = vrot.lane.b32.xlu1 %v2488_v2, %s2904_s13  ;;  %362 = vrot.lane.b32.xlu0 %v34_v0, %s2904_s13  ;;  %v2444_v35 = vld [vmem:[%s3421_s1 + $0x90] sm:$0xff]  ;;  %v2445_v37 = vld [vmem:[%s3421_s1 + $0x98] sm:$0xff] }
   0xb   :  { %v2451_v38 = vld [vmem:[%s3421_s1 + $0xa0] sm:$0xff]  ;;  %v2452_v40 = vld [vmem:[%s3421_s1 + $0xa8] sm:$0xff]  ;;  %v2453_v41 = vld [vmem:[%s3421_s1 + $0xb0] sm:$0xff] }
   0xc   :  { %v2454_v43 = vld [vmem:[%s3421_s1 + $0xb8] sm:$0xff]  ;;  %v2460_v44 = vld [vmem:[%s3421_s1 + $0xc0] sm:$0xff]  ;;  %v2461_v46 = vld [vmem:[%s3421_s1 + $0xc8] sm:$0xff] }
   0xd   :  { %v2462_v47 = vld [vmem:[%s3421_s1 + $0xd0] sm:$0xff]  ;;  %v2463_v49 = vld [vmem:[%s3421_s1 + $0xd8] sm:$0xff]  ;;  %v2469_v50 = vld [vmem:[%s3421_s1 + $0xe0] sm:$0xff] }
   0xe   :  { %1453 = vrot.lane.b32.xlu1 %v2488_v2, %s2905_s14  ;;  %472 = vrot.lane.b32.xlu0 %v34_v0, %s2905_s14  ;;  %v2470_v52 = vld [vmem:[%s3421_s1 + $0xe8] sm:$0xff]  ;;  %v2471_v53 = vld [vmem:[%s3421_s1 + $0xf0] sm:$0xff]  ;;  %s2911_s14 = smov 1  }
   0xf   :  { %v2472_v54 = vld [vmem:[%s3421_s1 + $0xf8] sm:$0xff]  ;;  %v2478_v55 = vld [vmem:[%s3421_s1 + $0x100] sm:$0xff]  ;;  %v2479_v56 = vld [vmem:[%s3421_s1 + $0x108] sm:$0xff] }
  0x10   :  { %v2480_v57 = vld [vmem:[%s3421_s1 + $0x110] sm:$0xff]  ;;  %v2481_v58 = vld [vmem:[%s3421_s1 + $0x118] sm:$0xff]  ;;  %v2487_v61 = vld [vmem:[%s3423_s7] ss:$0 sm:$0xff] }
  0x12   :  { %1546 = vrot.lane.b32.xlu1 %v2488_v2, %s2906_s15  ;;  %582 = vrot.lane.b32.xlu0 %v34_v0, %s2906_s15 }
  0x16   :  { %1639 = vrot.lane.b32.xlu1 %v2488_v2, %s2907_s16  ;;  %692 = vrot.lane.b32.xlu0 %v34_v0, %s2907_s16 }
  0x1a   :  { %1732 = vrot.lane.b32.xlu1 %v2488_v2, %s2908_s17  ;;  %802 = vrot.lane.b32.xlu0 %v34_v0, %s2908_s17 }
  0x1e   :  { %1825 = vrot.lane.b32.xlu1 %v2488_v2, %s2909_s0  ;;  %912 = vrot.lane.b32.xlu0 %v34_v0, %s2909_s0 }
  0x22   :  { %1024 = vperm.xlu1 %2853, %v30_v4   ;;  %1019 = vperm.xlu0 %2852, %v29_v5  }
  0x26   :  { %1034 = vperm.xlu0 %2852, %v32_v6   ;;  %1029 = vperm.xlu1 %2853, %v31_v7  }
  0x74   :  { %v46_v8 = vpop.permute.xlu0 %45  ;;  %v253_v11 = vpop.permute.xlu1 %252 }
  0x75   :  { %2634 = vmatprep.subr.msk.mxu0 %vm60_vm1, %v46_v8 }
  0x76   :  { %2635 = vmatpush3.msk.msra.mxu0 %vm60_vm1, %v46_v8 }
  0x77   :  { %2637 = vmatmul.mubr.msk.f32.vlgmr.msra.gmra.mrb[0].mxu0 %vm47_vm0, %v2411_v9  ;;  %2642 = vmatprep.subr.msk.mxu0 %vm60_vm1, %v34_v0 }
  0x78   :  { %v1092_v12 = vpop.permute.xlu0 %1091  ;;  %2639 = vmatprep.mubr.msk.f32.mxu0 %vm47_vm0, %v2412_v10  ;;  %2643 = vmatpush3.msk.msra.mxu0 %vm60_vm1, %v34_v0  ;;  %v1268_v15 = vpop.permute.xlu1 %1267 }
  0x79   :  { %2706 = vmatprep.subr.msk.mxu1 %vm60_vm1, %v1092_v12  ;;  %2650 = vmatprep.subr.msk.mxu0 %vm60_vm1, %v253_v11 }
  0x7a   :  { %2707 = vmatpush3.msk.msra.mxu1 %vm60_vm1, %v1092_v12 }
  0x7b   :  { %2640 = vmatmul.mubr.msk.f32.gmra.mrb[2].mxu0 %vm47_vm0, %v2413_v13  ;;  %2709 = vmatmul.mubr.msk.f32.vlgmr.msra.gmra.mrb[0].mxu1 %vm47_vm0, %v2411_v9 }
  0x7c   :  { %2714 = vmatprep.subr.msk.mxu1 %vm60_vm1, %v2488_v2  ;;  %2644 = vmatprep.mubr.msk.f32.mxu0 %vm47_vm0, %v35_v14  ;;  %v363_v18 = vpop.permute.xlu0 %362  ;;  %v1361_v21 = vpop.permute.xlu1 %1360 }
  0x7d   :  { %2715 = vmatpush3.msk.msra.mxu1 %vm60_vm1, %v2488_v2  ;;  %2711 = vmatprep.mubr.msk.f32.mxu1 %vm47_vm0, %v2412_v10 }
  0x7e   :  { %2722 = vmatprep.subr.msk.mxu1 %vm60_vm1, %v1268_v15 }
  0x7f   :  { %2645 = vmatmul.mubr.msk.f32.vlgmr.msra.gmra.mrb[0].mxu0 %vm47_vm0, %v36_v16  ;;  %2712 = vmatmul.mubr.msk.f32.gmra.mrb[2].mxu1 %vm47_vm0, %v2413_v13 }
  0x80   :  { %2651 = vmatpush3.msk.msra.mxu0 %vm60_vm1, %v253_v11  ;;  %2647 = vmatprep.mubr.msk.f32.mxu0 %vm47_vm0, %v37_v17  ;;  %v473_v24 = vpop.permute.xlu0 %472  ;;  %v1454_v27 = vpop.permute.xlu1 %1453 }
  0x81   :  { %2716 = vmatprep.mubr.msk.f32.mxu1 %vm47_vm0, %v35_v14  ;;  %2658 = vmatprep.subr.msk.mxu0 %vm60_vm1, %v363_v18 }
  0x83   :  { %2648 = vmatmul.mubr.msk.f32.gmra.mrb[2].mxu0 %vm47_vm0, %v38_v19  ;;  %2717 = vmatmul.mubr.msk.f32.vlgmr.msra.gmra.mrb[0].mxu1 %vm47_vm0, %v36_v16 }
  0x84   :  { %2723 = vmatpush3.msk.msra.mxu1 %vm60_vm1, %v1268_v15  ;;  %2652 = vmatprep.mubr.msk.f32.mxu0 %vm47_vm0, %v2424_v20  ;;  %v583_v30 = vpop.permute.xlu0 %582  ;;  %v1547_v33 = vpop.permute.xlu1 %1546 }
  0x85   :  { %2719 = vmatprep.mubr.msk.f32.mxu1 %vm47_vm0, %v37_v17  ;;  %2730 = vmatprep.subr.msk.mxu1 %vm60_vm1, %v1361_v21 }
  0x87   :  { %2653 = vmatmul.mubr.msk.f32.vlgmr.msra.gmra.mrb[0].mxu0 %vm47_vm0, %v2425_v22  ;;  %2720 = vmatmul.mubr.msk.f32.gmra.mrb[2].mxu1 %vm47_vm0, %v38_v19 }
  0x88   :  { %2655 = vmatprep.mubr.msk.f32.mxu0 %vm47_vm0, %v2426_v23  ;;  %2724 = vmatprep.mubr.msk.f32.mxu1 %vm47_vm0, %v2424_v20  ;;  %v693_v36 = vpop.permute.xlu0 %692  ;;  %v1640_v39 = vpop.permute.xlu1 %1639 }
  0x89   :  { %2659 = vmatpush3.msk.msra.mxu0 %vm60_vm1, %v363_v18 }
  0x8a   :  { %2666 = vmatprep.subr.msk.mxu0 %vm60_vm1, %v473_v24 }
  0x8b   :  { %2656 = vmatmul.mubr.msk.f32.gmra.mrb[2].mxu0 %vm47_vm0, %v2427_v25  ;;  %2725 = vmatmul.mubr.msk.f32.vlgmr.msra.gmra.mrb[0].mxu1 %vm47_vm0, %v2425_v22 }
  0x8c   :  { %2731 = vmatpush3.msk.msra.mxu1 %vm60_vm1, %v1361_v21  ;;  %2660 = vmatprep.mubr.msk.f32.mxu0 %vm47_vm0, %v2433_v26  ;;  %v803_v42 = vpop.permute.xlu0 %802  ;;  %v1733_v45 = vpop.permute.xlu1 %1732 }
  0x8d   :  { %2727 = vmatprep.mubr.msk.f32.mxu1 %vm47_vm0, %v2426_v23  ;;  %2738 = vmatprep.subr.msk.mxu1 %vm60_vm1, %v1454_v27 }
  0x8f   :  { %2661 = vmatmul.mubr.msk.f32.vlgmr.msra.gmra.mrb[0].mxu0 %vm47_vm0, %v2434_v28  ;;  %2728 = vmatmul.mubr.msk.f32.gmra.mrb[2].mxu1 %vm47_vm0, %v2427_v25 }
  0x90   :  { %2663 = vmatprep.mubr.msk.f32.mxu0 %vm47_vm0, %v2435_v29  ;;  %2732 = vmatprep.mubr.msk.f32.mxu1 %vm47_vm0, %v2433_v26  ;;  %v913_v48 = vpop.permute.xlu0 %912  ;;  %v1826_v51 = vpop.permute.xlu1 %1825 }
  0x91   :  { %2667 = vmatpush3.msk.msra.mxu0 %vm60_vm1, %v473_v24 }
  0x92   :  { %2674 = vmatprep.subr.msk.mxu0 %vm60_vm1, %v583_v30 }
  0x93   :  { %2664 = vmatmul.mubr.msk.f32.gmra.mrb[2].mxu0 %vm47_vm0, %v2436_v31  ;;  %2733 = vmatmul.mubr.msk.f32.vlgmr.msra.gmra.mrb[0].mxu1 %vm47_vm0, %v2434_v28 }
  0x94   :  { %2739 = vmatpush3.msk.msra.mxu1 %vm60_vm1, %v1454_v27  ;;  %2668 = vmatprep.mubr.msk.f32.mxu0 %vm47_vm0, %v2442_v32 }
  0x95   :  { %2735 = vmatprep.mubr.msk.f32.mxu1 %vm47_vm0, %v2435_v29  ;;  %2746 = vmatprep.subr.msk.mxu1 %vm60_vm1, %v1547_v33 }
  0x97   :  { %2669 = vmatmul.mubr.msk.f32.vlgmr.msra.gmra.mrb[0].mxu0 %vm47_vm0, %v2443_v34  ;;  %2736 = vmatmul.mubr.msk.f32.gmra.mrb[2].mxu1 %vm47_vm0, %v2436_v31 }
  0x98   :  { %2671 = vmatprep.mubr.msk.f32.mxu0 %vm47_vm0, %v2444_v35  ;;  %2740 = vmatprep.mubr.msk.f32.mxu1 %vm47_vm0, %v2442_v32 }
  0x99   :  { %2675 = vmatpush3.msk.msra.mxu0 %vm60_vm1, %v583_v30 }
  0x9a   :  { %2682 = vmatprep.subr.msk.mxu0 %vm60_vm1, %v693_v36 }
  0x9b   :  { %2672 = vmatmul.mubr.msk.f32.gmra.mrb[2].mxu0 %vm47_vm0, %v2445_v37  ;;  %2741 = vmatmul.mubr.msk.f32.vlgmr.msra.gmra.mrb[0].mxu1 %vm47_vm0, %v2443_v34 }
  0x9c   :  { %2747 = vmatpush3.msk.msra.mxu1 %vm60_vm1, %v1547_v33  ;;  %2676 = vmatprep.mubr.msk.f32.mxu0 %vm47_vm0, %v2451_v38 }
  0x9d   :  { %2743 = vmatprep.mubr.msk.f32.mxu1 %vm47_vm0, %v2444_v35  ;;  %2754 = vmatprep.subr.msk.mxu1 %vm60_vm1, %v1640_v39 }
  0x9f   :  { %2677 = vmatmul.mubr.msk.f32.vlgmr.msra.gmra.mrb[0].mxu0 %vm47_vm0, %v2452_v40  ;;  %2744 = vmatmul.mubr.msk.f32.gmra.mrb[2].mxu1 %vm47_vm0, %v2445_v37 }
  0xa0   :  { %2679 = vmatprep.mubr.msk.f32.mxu0 %vm47_vm0, %v2453_v41  ;;  %2748 = vmatprep.mubr.msk.f32.mxu1 %vm47_vm0, %v2451_v38 }
  0xa1   :  { %2683 = vmatpush3.msk.msra.mxu0 %vm60_vm1, %v693_v36  ;;  %v1025_v59 = vpop.permute.xlu1 %1024  ;;  %v1020_v0 = vpop.permute.xlu0 %1019 }
  0xa2   :  { %2690 = vmatprep.subr.msk.mxu0 %vm60_vm1, %v803_v42 }
  0xa3   :  { %2680 = vmatmul.mubr.msk.f32.gmra.mrb[2].mxu0 %vm47_vm0, %v2454_v43  ;;  %2749 = vmatmul.mubr.msk.f32.vlgmr.msra.gmra.mrb[0].mxu1 %vm47_vm0, %v2452_v40 }
  0xa4   :  { %2755 = vmatpush3.msk.msra.mxu1 %vm60_vm1, %v1640_v39  ;;  %2684 = vmatprep.mubr.msk.f32.mxu0 %vm47_vm0, %v2460_v44 }
  0xa5   :  { %2751 = vmatprep.mubr.msk.f32.mxu1 %vm47_vm0, %v2453_v41  ;;  %2762 = vmatprep.subr.msk.mxu1 %vm60_vm1, %v1733_v45  ;;  %v1035_v18 = vpop.permute.xlu0 %1034  ;;  %v1030_v24 = vpop.permute.xlu1 %1029 }
  0xa7   :  { %2685 = vmatmul.mubr.msk.f32.vlgmr.msra.gmra.mrb[0].mxu0 %vm47_vm0, %v2461_v46  ;;  %2752 = vmatmul.mubr.msk.f32.gmra.mrb[2].mxu1 %vm47_vm0, %v2454_v43 }
  0xa8   :  { %2687 = vmatprep.mubr.msk.f32.mxu0 %vm47_vm0, %v2462_v47  ;;  %2756 = vmatprep.mubr.msk.f32.mxu1 %vm47_vm0, %v2460_v44 }
  0xa9   :  { %2691 = vmatpush3.msk.msra.mxu0 %vm60_vm1, %v803_v42 }
  0xaa   :  { %2698 = vmatprep.subr.msk.mxu0 %vm60_vm1, %v913_v48 }
  0xab   :  { %2688 = vmatmul.mubr.msk.f32.gmra.mrb[2].mxu0 %vm47_vm0, %v2463_v49  ;;  %2757 = vmatmul.mubr.msk.f32.vlgmr.msra.gmra.mrb[0].mxu1 %vm47_vm0, %v2461_v46 }
  0xac   :  { %2763 = vmatpush3.msk.msra.mxu1 %vm60_vm1, %v1733_v45  ;;  %2692 = vmatprep.mubr.msk.f32.mxu0 %vm47_vm0, %v2469_v50 }
  0xad   :  { %2759 = vmatprep.mubr.msk.f32.mxu1 %vm47_vm0, %v2462_v47  ;;  %2770 = vmatprep.subr.msk.mxu1 %vm60_vm1, %v1826_v51 }
  0xaf   :  { %2693 = vmatmul.mubr.msk.f32.vlgmr.msra.gmra.mrb[0].mxu0 %vm47_vm0, %v2470_v52  ;;  %2760 = vmatmul.mubr.msk.f32.gmra.mrb[2].mxu1 %vm47_vm0, %v2463_v49 }
  0xb0   :  { %2695 = vmatprep.mubr.msk.f32.mxu0 %vm47_vm0, %v2471_v53  ;;  %2764 = vmatprep.mubr.msk.f32.mxu1 %vm47_vm0, %v2469_v50 }
  0xb1   :  { %2699 = vmatpush3.msk.msra.mxu0 %vm60_vm1, %v913_v48 }
  0xb3   :  { %2696 = vmatmul.mubr.msk.f32.gmra.mrb[2].mxu0 %vm47_vm0, %v2472_v54  ;;  %2765 = vmatmul.mubr.msk.f32.vlgmr.msra.gmra.mrb[0].mxu1 %vm47_vm0, %v2470_v52 }
  0xb4   :  { %2771 = vmatpush3.msk.msra.mxu1 %vm60_vm1, %v1826_v51  ;;  %2700 = vmatprep.mubr.msk.f32.mxu0 %vm47_vm0, %v2478_v55 }
  0xb5   :  { %2767 = vmatprep.mubr.msk.f32.mxu1 %vm47_vm0, %v2471_v53 }
  0xb7   :  { %2701 = vmatmul.mubr.msk.f32.vlgmr.msra.gmra.mrb[0].mxu0 %vm47_vm0, %v2479_v56  ;;  %2768 = vmatmul.mubr.msk.f32.gmra.mrb[2].mxu1 %vm47_vm0, %v2472_v54 }
  0xb8   :  { %2703 = vmatprep.mubr.msk.f32.mxu0 %vm47_vm0, %v2480_v57  ;;  %2772 = vmatprep.mubr.msk.f32.mxu1 %vm47_vm0, %v2478_v55 }
  0xbb   :  { %2704 = vmatmul.mubr.msk.f32.gmra.mrb[2].mxu0 %vm47_vm0, %v2481_v58  ;;  %2773 = vmatmul.mubr.msk.f32.vlgmr.msra.gmra.mrb[0].mxu1 %vm47_vm0, %v2479_v56 }
  0xbc   :  { %2775 = vmatprep.mubr.msk.f32.mxu1 %vm47_vm0, %v2480_v57 }
  0xbf   :  { %2776 = vmatmul.mubr.msk.f32.gmra.mrb[2].mxu1 %vm47_vm0, %v2481_v58 }
 0x18a   :  { %v2702_v60 = vpop.f32.mrb[0].mxu0 }
 0x18b   :  { %v3194_v62 = vadd.f32 %v2702_v60, %v1025_v59  ;;  %v994_v63 = vpop.f32.mrb[1].mxu0 }
 0x18c   :  { %v3197_v4 = vadd.f32 %v1020_v0, %v994_v63 }
 0x18d   :  { %v1048_v1 = vmul.f32 %v2487_v61, %v3194_v62 }
 0x18e   :  { %v2705_v2 = vpop.f32.mrb[2].mxu0  ;;  %v2774_v3 = vpop.f32.mrb[0].mxu1  ;;  %v1047_v15 = vmul.f32 %v2487_v61, %v3197_v4 }
 0x18f   :  { %v3199_v5 = vadd.f32 %v2774_v3, %v1025_v59  ;;  %v1004_v6 = vpop.f32.mrb[3].mxu0  ;;  %v1895_v7 = vpop.f32.mrb[1].mxu1  ;;  %v1055_v8 = vsel %vm1051_vm2, %v1048_v1, 0.0  ;;  %v1069_v17 = vmul.f32 %v1048_v1, %v3194_v62  ;;  %v3212_v21 = vadd.f32 %v2705_v2, %v1035_v18 }
 0x190   :  { %v3202_v9 = vadd.f32 %v1895_v7, %v1020_v0  ;;  %1056 = vadd.xlane.f32.xlu0 %v1055_v8  ;;  %v1052_v19 = vsel %vm1051_vm2, %v1047_v15, 0.0  ;;  %v1068_v27 = vmul.f32 %v1047_v15, %v3197_v4  ;;  %v3220_v28 = vadd.f32 %v1030_v24, %v1004_v6 }
 0x191   :  { %v1923_v10 = vmul.f32 %v2487_v61, %v3199_v5  ;;  %v1075_v22 = vsel %vm1051_vm2, %v1069_v17, 0.0  ;;  %v1050_v30 = vmul.f32 %v2487_v61, %v3212_v21 }
 0x192   :  { %v2777_v11 = vpop.f32.mrb[2].mxu1  ;;  %v1922_v12 = vmul.f32 %v2487_v61, %v3202_v9  ;;  %v1072_v32 = vsel %vm1051_vm2, %v1068_v27, 0.0  ;;  %v1049_v35 = vmul.f32 %v2487_v61, %v3220_v28  ;;  %v1983_v27 = vld [vmem:[%s3424_s3 + $0x8] sm:$0xff] }
 0x193   :  { %v1905_v13 = vpop.f32.mrb[3].mxu1  ;;  %v1929_v14 = vsel %vm1051_vm2, %v1923_v10, 0.0  ;;  %v1943_v20 = vmul.f32 %v1923_v10, %v3199_v5  ;;  %v3216_v25 = vadd.f32 %v2777_v11, %v1035_v18  ;;  %v1061_v34 = vsel %vm1051_vm2, %v1050_v30, 0.0 }
 0x194   :  { %1930 = vadd.xlane.f32.xlu1 %v1929_v14  ;;  %v1926_v16 = vsel %vm1051_vm2, %v1922_v12, 0.0  ;;  %v1942_v23 = vmul.f32 %v1922_v12, %v3202_v9  ;;  %v3224_v31 = vadd.f32 %v1905_v13, %v1030_v24  ;;  %v1058_v38 = vsel %vm1051_vm2, %v1049_v35, 0.0 }
 0x195   :  { %1927 = vadd.xlane.f32.xlu0 %v1926_v16  ;;  %v1949_v26 = vsel %vm1051_vm2, %v1943_v20, 0.0  ;;  %v1925_v33 = vmul.f32 %v2487_v61, %v3216_v25  ;;  %v1070_v39 = vmul.f32 %v1049_v35, %v3220_v28  ;;  %v1071_v43 = vmul.f32 %v1050_v30, %v3212_v21 }
 0x196   :  { %v1946_v29 = vsel %vm1051_vm2, %v1942_v23, 0.0  ;;  %v1924_v37 = vmul.f32 %v2487_v61, %v3224_v31 }
 0x197   :  { %v1935_v36 = vsel %vm1051_vm2, %v1925_v33, 0.0  ;;  %v1078_v42 = vsel %vm1051_vm2, %v1070_v39, 0.0  ;;  %v1945_v45 = vmul.f32 %v1925_v33, %v3216_v25  ;;  %v1081_v46 = vsel %vm1051_vm2, %v1071_v43, 0.0  ;;  %v1982_v39 = vld [vmem:[%s3424_s3] sm:$0xff] }
 0x198   :  { %1053 = vadd.xlane.f32.xlu1 %v1052_v19  ;;  %v1932_v40 = vsel %vm1051_vm2, %v1924_v37, 0.0  ;;  %v1944_v41 = vmul.f32 %v1924_v37, %v3224_v31 }
 0x199   :  { %1076 = vadd.xlane.f32.xlu0 %v1075_v22  ;;  %v1955_v47 = vsel %vm1051_vm2, %v1945_v45, 0.0 }
 0x19a   :  { %v1952_v44 = vsel %vm1051_vm2, %v1944_v41, 0.0 }
 0x19c   :  { %1950 = vadd.xlane.f32.xlu1 %v1949_v26 }
 0x19d   :  { %1947 = vadd.xlane.f32.xlu0 %v1946_v29 }
 0x1a0   :  { %1073 = vadd.xlane.f32.xlu1 %v1072_v32 }
 0x1a1   :  { %1062 = vadd.xlane.f32.xlu0 %v1061_v34 }
 0x1a4   :  { %1936 = vadd.xlane.f32.xlu1 %v1935_v36 }
 0x1a5   :  { %1059 = vadd.xlane.f32.xlu0 %v1058_v38 }
 0x1a8   :  { %1933 = vadd.xlane.f32.xlu1 %v1932_v40 }
 0x1a9   :  { %1079 = vadd.xlane.f32.xlu0 %v1078_v42 }
 0x1ac   :  { %1953 = vadd.xlane.f32.xlu1 %v1952_v44 }
 0x1ad   :  { %1082 = vadd.xlane.f32.xlu0 %v1081_v46  ;;  %v1984_v46 = vld [vmem:[%s3424_s3 + $0x10] sm:$0xff] }
 0x1b0   :  { %1956 = vadd.xlane.f32.xlu1 %v1955_v47 }
 0x21d   :  { %v1057_v48 = vpop.xlane.xlu0 %1056 }
 0x221   :  { %v1931_v49 = vpop.xlane.xlu1 %1930 }
 0x222   :  { %v1928_v50 = vpop.xlane.xlu0 %1927  ;;  %v1939_v51 = vadd.f32 %v1931_v49, %v1057_v48 }
 0x224   :  { %v3242_v54 = vmul.f32 0.0078125, %v1939_v51  ;;  %v1985_v51 = vld [vmem:[%s3424_s3 + $0x18] sm:$0xff] }
 0x225   :  { %v1054_v52 = vpop.xlane.xlu1 %1053 }
 0x226   :  { %v1077_v53 = vpop.xlane.xlu0 %1076  ;;  %v1938_v55 = vadd.f32 %v1928_v50, %v1054_v52  ;;  %v1971_v59 = vmul.f32 %v3242_v54, %v3242_v54  ;;  %v1998_v50 = vld [vmem:[%s3425_s4] sm:$0xff] }
 0x228   :  { %v1962_v60 = vmul.f32 0.0078125, %v1938_v55 }
 0x229   :  { %v1951_v56 = vpop.xlane.xlu1 %1950 }
 0x22a   :  { %v1959_v57 = vadd.f32 %v1951_v56, %v1077_v53  ;;  %v1948_v58 = vpop.xlane.xlu0 %1947  ;;  %v1970_v3 = vmul.f32 %v1962_v60, %v1962_v60 }
 0x22c   :  { %v1967_v61 = vmul.f32 0.0078125, %v1959_v57 }
 0x22d   :  { %v1074_v63 = vpop.xlane.xlu1 %1073 }
 0x22e   :  { %v1975_v0 = vsub.f32 %v1967_v61, %v1971_v59  ;;  %v1958_v1 = vadd.f32 %v1948_v58, %v1074_v63  ;;  %v1063_v2 = vpop.xlane.xlu0 %1062  ;;  %v2000_v58 = vld [vmem:[%s3425_s4 + $0x10] sm:$0xff]  ;;  %v1999_v59 = vld [vmem:[%s3425_s4 + $0x8] sm:$0xff] }
 0x230   :  { %v1979_v6 = vmax.f32 %v1975_v0, 0.0  ;;  %v1966_v7 = vmul.f32 0.0078125, %v1958_v1  ;;  %v2001_v0 = vld [vmem:[%s3425_s4 + $0x18] sm:$0xff] }
 0x231   :  { %v1937_v8 = vpop.xlane.xlu1 %1936 }
 0x232   :  { %v1987_v10 = vadd.f32 1e-05, %v1979_v6  ;;  %v1974_v11 = vsub.f32 %v1966_v7, %v1970_v3  ;;  %v1060_v12 = vpop.xlane.xlu0 %1059  ;;  %v1941_v18 = vadd.f32 %v1937_v8, %v1063_v2 }
 0x234   :  { %2854 = vrsqrt.f32 %v1987_v10  ;;  %v1978_v13 = vmax.f32 %v1974_v11, 0.0  ;;  %v1965_v23 = vmul.f32 0.0078125, %v1941_v18 }
 0x235   :  { %v1934_v14 = vpop.xlane.xlu1 %1933 }
 0x236   :  { %v1986_v15 = vadd.f32 1e-05, %v1978_v13  ;;  %v1940_v16 = vadd.f32 %v1934_v14, %v1060_v12  ;;  %v1080_v17 = vpop.xlane.xlu0 %1079  ;;  %v1973_v36 = vmul.f32 %v1965_v23, %v1965_v23 }
 0x238   :  { %2856 = vrsqrt.f32 %v1986_v15  ;;  %v1964_v19 = vmul.f32 0.0078125, %v1940_v16 }
 0x239   :  { %v1954_v20 = vpop.xlane.xlu1 %1953 }
 0x23a   :  { %v1960_v22 = vadd.f32 %v1954_v20, %v1080_v17  ;;  %v1972_v24 = vmul.f32 %v1964_v19, %v1964_v19  ;;  %v1083_v29 = vpop.xlane.xlu0 %1082 }
 0x23c   :  { %v1968_v26 = vmul.f32 0.0078125, %v1960_v22 }
 0x23d   :  { %v1957_v30 = vpop.xlane.xlu1 %1956 }
 0x23e   :  { %v2855_v32 = vpop.eup %2854  ;;  %v1976_v33 = vsub.f32 %v1968_v26, %v1972_v24  ;;  %v1961_v34 = vadd.f32 %v1957_v30, %v1083_v29 }
 0x23f   :  { %v1995_v35 = vmul.f32 %v2855_v32, %v1983_v27 }
 0x240   :  { %v1980_v37 = vmax.f32 %v1976_v33, 0.0  ;;  %v1969_v38 = vmul.f32 0.0078125, %v1961_v34 }
 0x241   :  { %2030 = vperm.xlu1 %2853, %v1995_v35   ;;  %v2003_v57 = vmul.f32 %v1995_v35, %v3242_v54 }
 0x242   :  { %v2857_v40 = vpop.eup %2856  ;;  %v1988_v41 = vadd.f32 1e-05, %v1980_v37  ;;  %v1977_v42 = vsub.f32 %v1969_v38, %v1973_v36 }
 0x243   :  { %v1994_v43 = vmul.f32 %v2857_v40, %v1982_v39  ;;  %v2007_v61 = vsub.f32 %v1999_v59, %v2003_v57  ;;  %v3282_v39 = vld [vmem:[%s3426_s5 + $0x28] sm:$0xff] }
 0x244   :  { %2858 = vrsqrt.f32 %v1988_v41  ;;  %v1981_v44 = vmax.f32 %v1977_v42, 0.0  ;;  %v3287_v40 = vld [vmem:[%s3426_s5 + $0x8] sm:$0xff] }
 0x245   :  { %2025 = vperm.xlu0 %2852, %v1994_v43   ;;  %v2002_v49 = vmul.f32 %v1994_v43, %v1962_v60 }
 0x246   :  { %v1989_v45 = vadd.f32 1e-05, %v1981_v44 }
 0x247   :  { %v2006_v53 = vsub.f32 %v1998_v50, %v2002_v49 }
 0x248   :  { %2860 = vrsqrt.f32 %v1989_v45 }
 0x24e   :  { %v2859_v47 = vpop.eup %2858 }
 0x24f   :  { %v1996_v48 = vmul.f32 %v2859_v47, %v1984_v46 }
 0x251   :  { %2035 = vperm.xlu1 %2853, %v1996_v48   ;;  %v2004_v56 = vmul.f32 %v1996_v48, %v1964_v19 }
 0x252   :  { %v2861_v52 = vpop.eup %2860 }
 0x253   :  { %v1997_v55 = vmul.f32 %v2861_v52, %v1985_v51  ;;  %v2008_v60 = vsub.f32 %v2000_v58, %v2004_v56  ;;  %v2018_v56 = vld [vmem:[%s3426_s5 + $0x40] sm:$0xff] }
 0x255   :  { %2049 = vperm.xlu1 %2853, %v2006_v53   ;;  %2040 = vperm.xlu0 %2852, %v1997_v55   ;;  %v2005_v63 = vmul.f32 %v1997_v55, %v1965_v23  ;;  %v2010_v55 = vld [vmem:[%s3426_s5] sm:$0xff] }
 0x257   :  { %v2009_v54 = vsub.f32 %v2001_v0, %v2005_v63 }
 0x259   :  { %2059 = vperm.xlu1 %2853, %v2008_v60   ;;  %2054 = vperm.xlu0 %2852, %v2007_v61  }
 0x25d   :  { %2064 = vperm.xlu0 %2852, %v2009_v54   ;;  %v2017_v54 = vld [vmem:[%s3426_s5 + $0x38] sm:$0xff] }
 0x2c0   :  { %v2031_v1 = vpop.permute.xlu1 %2030 }
 0x2c1   :  { %v2239_v12 = vmul.f32 %v2031_v1, %v3199_v5  ;;  %v2044_v5 = vmul.f32 %v2031_v1, %v3194_v62  ;;  %v2013_v1 = vld [vmem:[%s3426_s5 + $0x18] sm:$0xff] }
 0x2c4   :  { %v2026_v2 = vpop.permute.xlu0 %2025 }
 0x2c5   :  { %v2238_v6 = vmul.f32 %v2026_v2, %v3202_v9  ;;  %v2043_v26 = vmul.f32 %v2026_v2, %v3197_v4 }
 0x2d0   :  { %v2036_v3 = vpop.permute.xlu1 %2035 }
 0x2d1   :  { %v2240_v20 = vmul.f32 %v2036_v3, %v3224_v31  ;;  %v2045_v62 = vmul.f32 %v2036_v3, %v3220_v28  ;;  %v3297_v28 = vld [vmem:[%s3426_s5 + $0x20] sm:$0xff] }
 0x2d4   :  { %v2050_v7 = vpop.permute.xlu1 %2049  ;;  %v2041_v8 = vpop.permute.xlu0 %2040 }
 0x2d5   :  { %v2242_v10 = vadd.f32 %v2238_v6, %v2050_v7  ;;  %v2241_v15 = vmul.f32 %v2041_v8, %v3216_v25  ;;  %v2067_v27 = vadd.f32 %v2050_v7, %v2043_v26  ;;  %v2046_v37 = vmul.f32 %v2041_v8, %v3212_v21  ;;  %v3292_v21 = vld [vmem:[%s3426_s5 + $0x48] sm:$0xff] }
 0x2d7   :  { %v2539_v11 = vmul.f32 -1.442695, %v2242_v10  ;;  %v2534_v32 = vmul.f32 -1.442695, %v2067_v27  ;;  %v2016_v10 = vld [vmem:[%s3426_s5 + $0x30] sm:$0xff] }
 0x2d8   :  { %v2055_v13 = vpop.permute.xlu0 %2054  ;;  %v2060_v18 = vpop.permute.xlu1 %2059 }
 0x2d9   :  { %v2243_v14 = vadd.f32 %v2239_v12, %v2055_v13  ;;  %2862 = vpow2.f32 %v2539_v11  ;;  %v2244_v22 = vadd.f32 %v2240_v20, %v2060_v18  ;;  %v2068_v25 = vadd.f32 %v2055_v13, %v2044_v5  ;;  %v2012_v11 = vld [vmem:[%s3426_s5 + $0x10] sm:$0xff] }
 0x2da   :  { %v2069_v43 = vadd.f32 %v2060_v18, %v2045_v62  ;;  %v2020_v18 = vld [vmem:[%s3426_s5 + $0x50] sm:$0xff] }
 0x2db   :  { %v2540_v16 = vmul.f32 -1.442695, %v2243_v14  ;;  %v2541_v23 = vmul.f32 -1.442695, %v2244_v22  ;;  %v2535_v34 = vmul.f32 -1.442695, %v2068_v25 }
 0x2dc   :  { %v2065_v17 = vpop.permute.xlu0 %2064  ;;  %v2536_v53 = vmul.f32 -1.442695, %v2069_v43 }
 0x2dd   :  { %v2245_v19 = vadd.f32 %v2241_v15, %v2065_v17  ;;  %2864 = vpow2.f32 %v2540_v16  ;;  %v2070_v4 = vadd.f32 %v2065_v17, %v2046_v37  ;;  %v2021_v17 = vld [vmem:[%s3426_s5 + $0x58] sm:$0xff] }
 0x2df   :  { %v2542_v9 = vmul.f32 -1.442695, %v2245_v19  ;;  %v2537_v44 = vmul.f32 -1.442695, %v2070_v4 }
 0x2e1   :  { %2866 = vpow2.f32 %v2542_v9 }
 0x2e2   :  { %2868 = vpow2.f32 %v2541_v23 }
 0x2e3   :  { %v2863_v24 = vpop.eup %2862 }
 0x2e4   :  { %v2258_v29 = vadd.f32 1.0, %v2863_v24 }
 0x2e6   :  { %2870 = vrcp.f32 %v2258_v29 }
 0x2e7   :  { %v2865_v30 = vpop.eup %2864 }
 0x2e8   :  { %v2259_v33 = vadd.f32 1.0, %v2865_v30 }
 0x2ea   :  { %2872 = vrcp.f32 %v2259_v33 }
 0x2eb   :  { %v2867_v31 = vpop.eup %2866  ;;  %2874 = vpow2.f32 %v2534_v32 }
 0x2ec   :  { %2876 = vpow2.f32 %v2535_v34  ;;  %v2261_v35 = vadd.f32 1.0, %v2867_v31  ;;  %v2869_v36 = vpop.eup %2868 }
 0x2ed   :  { %v2260_v38 = vadd.f32 1.0, %v2869_v36 }
 0x2ee   :  { %2878 = vrcp.f32 %v2261_v35 }
 0x2ef   :  { %2880 = vrcp.f32 %v2260_v38 }
 0x2f0   :  { %v2871_v41 = vpop.eup %2870  ;;  %2882 = vpow2.f32 %v2537_v44 }
 0x2f1   :  { %v2274_v52 = vmul.f32 %v2871_v41, %v3297_v28  ;;  %v2270_v61 = vmul.f32 %v2871_v41, %v2010_v55  ;;  %v2278_v63 = vmul.f32 %v2871_v41, %v2018_v56  ;;  %2884 = vpow2.f32 %v2536_v53 }
 0x2f3   :  { %v2294_v60 = vsel %vm1051_vm2, %v2274_v52, 0.0  ;;  %v2282_v2 = vsel %vm1051_vm2, %v2270_v61, 0.0  ;;  %v2306_v3 = vsel %vm1051_vm2, %v2278_v63, 0.0  ;;  %v2155_v52 = vlaneseq }
 0x2f4   :  { %v2873_v42 = vpop.eup %2872 }
 0x2f5   :  { %v2275_v45 = vmul.f32 %v2873_v42, %v3282_v39  ;;  %v2271_v46 = vmul.f32 %v2873_v42, %v3287_v40  ;;  %v2875_v47 = vpop.eup %2874  ;;  %v2279_v51 = vmul.f32 %v2873_v42, %v3292_v21 }
 0x2f6   :  { %v2877_v48 = vpop.eup %2876  ;;  %v2083_v57 = vadd.f32 1.0, %v2875_v47 }
 0x2f7   :  { %v2297_v49 = vsel %vm1051_vm2, %v2275_v45, 0.0  ;;  %v2285_v50 = vsel %vm1051_vm2, %v2271_v46, 0.0  ;;  %v2084_v58 = vadd.f32 1.0, %v2877_v48  ;;  %v2309_v59 = vsel %vm1051_vm2, %v2279_v51, 0.0 }
 0x2f8   :  { %2298 = vadd.xlane.f32.xlu1 %v2297_v49  ;;  %2286 = vadd.xlane.f32.xlu0 %v2285_v50  ;;  %v2879_v0 = vpop.eup %2878  ;;  %2886 = vrcp.f32 %v2083_v57 }
 0x2f9   :  { %2888 = vrcp.f32 %v2084_v58  ;;  %v2277_v6 = vmul.f32 %v2879_v0, %v2017_v54  ;;  %v2273_v7 = vmul.f32 %v2879_v0, %v2013_v1  ;;  %v2881_v8 = vpop.eup %2880  ;;  %v2281_v24 = vmul.f32 %v2879_v0, %v2021_v17 }
 0x2fa   :  { %v2883_v12 = vpop.eup %2882  ;;  %v2276_v15 = vmul.f32 %v2881_v8, %v2016_v10  ;;  %v2272_v16 = vmul.f32 %v2881_v8, %v2012_v11  ;;  %v2280_v26 = vmul.f32 %v2881_v8, %v2020_v18 }
 0x2fb   :  { %v2303_v13 = vsel %vm1051_vm2, %v2277_v6, 0.0  ;;  %v2291_v14 = vsel %vm1051_vm2, %v2273_v7, 0.0  ;;  %v2885_v19 = vpop.eup %2884  ;;  %v2086_v20 = vadd.f32 1.0, %v2883_v12  ;;  %v2315_v29 = vsel %vm1051_vm2, %v2281_v24, 0.0 }
 0x2fc   :  { %2310 = vadd.xlane.f32.xlu1 %v2309_v59  ;;  %2295 = vadd.xlane.f32.xlu0 %v2294_v60  ;;  %v2300_v9 = vsel %vm1051_vm2, %v2276_v15, 0.0  ;;  %v2288_v23 = vsel %vm1051_vm2, %v2272_v16, 0.0  ;;  %v2085_v27 = vadd.f32 1.0, %v2885_v19  ;;  %v2312_v25 = vsel %vm1051_vm2, %v2280_v26, 0.0 }
 0x2fd   :  { %2890 = vrcp.f32 %v2086_v20  ;;  %v2158_v59 = vshrl.u32 %v2155_v52, 7 }
 0x2fe   :  { %2892 = vrcp.f32 %v2085_v27 }
 0x300   :  { %2283 = vadd.xlane.f32.xlu1 %v2282_v2  ;;  %2307 = vadd.xlane.f32.xlu0 %v2306_v3 }
 0x302   :  { %v2887_v22 = vpop.eup %2886 }
 0x303   :  { %v2889_v5 = vpop.eup %2888  ;;  %v2095_v32 = vmul.f32 %v2887_v22, %v2010_v55  ;;  %v2099_v35 = vmul.f32 %v2887_v22, %v3297_v28  ;;  %v2103_v62 = vmul.f32 %v2887_v22, %v2018_v56  ;;  %v2156_v56 = vand.u32 127, %v2155_v52 }
 0x304   :  { %2304 = vadd.xlane.f32.xlu1 %v2303_v13  ;;  %2292 = vadd.xlane.f32.xlu0 %v2291_v14  ;;  %v2096_v30 = vmul.f32 %v2889_v5, %v3287_v40  ;;  %v2100_v31 = vmul.f32 %v2889_v5, %v3282_v39  ;;  %v2104_v4 = vmul.f32 %v2889_v5, %v3292_v21 }
 0x305   :  { %v2107_v34 = vsel %vm1051_vm2, %v2095_v32, 0.0  ;;  %v2119_v37 = vsel %vm1051_vm2, %v2099_v35, 0.0  ;;  %v2131_v41 = vsel %vm1051_vm2, %v2103_v62, 0.0  ;;  %v2161_v60 = vadd.s32 4294967288, %v2156_v56 }
 0x306   :  { %v2110_v33 = vsel %vm1051_vm2, %v2096_v30, 0.0  ;;  %v2122_v36 = vsel %vm1051_vm2, %v2100_v31, 0.0  ;;  %v2134_v40 = vsel %vm1051_vm2, %v2104_v4, 0.0  ;;  %v2168_v0 = vadd.s32 4294967280, %v2156_v56 }
 0x307   :  { %v2891_v38 = vpop.eup %2890  ;;  %v3357_v2 = vsub.s32 %v2161_v60, %v2158_v59 }
 0x308   :  { %2301 = vadd.xlane.f32.xlu1 %v2300_v9  ;;  %2289 = vadd.xlane.f32.xlu0 %v2288_v23  ;;  %v2102_v42 = vmul.f32 %v2891_v38, %v2017_v54  ;;  %v2098_v39 = vmul.f32 %v2891_v38, %v2013_v1  ;;  %v2893_v43 = vpop.eup %2892  ;;  %v2106_v48 = vmul.f32 %v2891_v38, %v2021_v17  ;;  %v2175_v1 = vadd.s32 4294967272, %v2156_v56 }
 0x309   :  { %v2101_v45 = vmul.f32 %v2893_v43, %v2016_v10  ;;  %v2097_v46 = vmul.f32 %v2893_v43, %v2012_v11  ;;  %v2105_v49 = vmul.f32 %v2893_v43, %v2020_v18  ;;  %v3355_v54 = vsub.s32 %v2156_v56, %v2158_v59 }
 0x30a   :  { %v2128_v28 = vsel %vm1051_vm2, %v2102_v42, 0.0  ;;  %v2116_v44 = vsel %vm1051_vm2, %v2098_v39, 0.0  ;;  %v2140_v50 = vsel %vm1051_vm2, %v2106_v48, 0.0  ;;  %v3359_v7 = vsub.s32 %v2168_v0, %v2158_v59 }
 0x30b   :  { %v2125_v21 = vsel %vm1051_vm2, %v2101_v45, 0.0  ;;  %v2113_v47 = vsel %vm1051_vm2, %v2097_v46, 0.0  ;;  %v2137_v51 = vsel %vm1051_vm2, %v2105_v49, 0.0  ;;  %v3363_v11 = vsub.s32 %v2175_v1, %v2158_v59 }
 0x30c   :  { %2316 = vadd.xlane.f32.xlu1 %v2315_v29  ;;  %2313 = vadd.xlane.f32.xlu0 %v2312_v25 }
 0x310   :  { %2111 = vadd.xlane.f32.xlu1 %v2110_v33  ;;  %2108 = vadd.xlane.f32.xlu0 %v2107_v34 }
 0x314   :  { %2123 = vadd.xlane.f32.xlu1 %v2122_v36  ;;  %2120 = vadd.xlane.f32.xlu0 %v2119_v37 }
 0x318   :  { %2135 = vadd.xlane.f32.xlu1 %v2134_v40  ;;  %2132 = vadd.xlane.f32.xlu0 %v2131_v41 }
 0x31c   :  { %2129 = vadd.xlane.f32.xlu1 %v2128_v28  ;;  %2117 = vadd.xlane.f32.xlu0 %v2116_v44 }
 0x320   :  { %2126 = vadd.xlane.f32.xlu1 %v2125_v21  ;;  %2114 = vadd.xlane.f32.xlu0 %v2113_v47 }
 0x324   :  { %2141 = vadd.xlane.f32.xlu1 %v2140_v50  ;;  %2138 = vadd.xlane.f32.xlu0 %v2137_v51 }
 0x385   :  { %v2299_v53 = vpop.xlane.xlu1 %2298  ;;  %v2287_v55 = vpop.xlane.xlu0 %2286 }
 0x386   :  { %v2356_v12 = vrot.slane %v2299_v53, %v3357_v2  ;;  %v2337_v13 = vrot.slane %v2287_v55, %v3357_v2 }
 0x389   :  { %v2311_v57 = vpop.xlane.xlu1 %2310  ;;  %v2296_v58 = vpop.xlane.xlu0 %2295 }
 0x38a   :  { %v2352_v8 = vrot.slane %v2296_v58, %v3355_v54  ;;  %v2375_v26 = vrot.slane %v2311_v57, %v3357_v2 }
 0x38c   :  { %v2357_v18 = vsel %vm2166_vm3, %v2356_v12, %v2352_v8 }
 0x38d   :  { %v2284_v61 = vpop.xlane.xlu1 %2283  ;;  %v2308_v63 = vpop.xlane.xlu0 %2307 }
 0x38e   :  { %v2333_v10 = vrot.slane %v2284_v61, %v3355_v54  ;;  %v2371_v20 = vrot.slane %v2308_v63, %v3355_v54 }
 0x390   :  { %v2338_v19 = vsel %vm2166_vm3, %v2337_v13, %v2333_v10  ;;  %v2376_v33 = vsel %vm2166_vm3, %v2375_v26, %v2371_v20 }
 0x391   :  { %v2305_v3 = vpop.xlane.xlu1 %2304  ;;  %v2293_v6 = vpop.xlane.xlu0 %2292 }
 0x392   :  { %v2366_v22 = vrot.slane %v2305_v3, %v3363_v11  ;;  %v2347_v9 = vrot.slane %v2293_v6, %v3363_v11 }
 0x395   :  { %v2302_v14 = vpop.xlane.xlu1 %2301  ;;  %v2290_v15 = vpop.xlane.xlu0 %2289 }
 0x396   :  { %v2361_v16 = vrot.slane %v2302_v14, %v3359_v7  ;;  %v2342_v17 = vrot.slane %v2290_v15, %v3359_v7 }
 0x398   :  { %v2362_v23 = vsel %vm2173_vm4, %v2361_v16, %v2357_v18  ;;  %v2343_v24 = vsel %vm2173_vm4, %v2342_v17, %v2338_v19 }
 0x399   :  { %v2317_v5 = vpop.xlane.xlu1 %2316  ;;  %v2314_v27 = vpop.xlane.xlu0 %2313  ;;  %v2348_v30 = vsel %vm2180_vm5, %v2347_v9, %v2343_v24  ;;  %v2367_v32 = vsel %vm2180_vm5, %v2366_v22, %v2362_v23 }
 0x39a   :  { %v2385_v29 = vrot.slane %v2317_v5, %v3363_v11  ;;  %v2380_v25 = vrot.slane %v2314_v27, %v3359_v7  ;;  %v2387_v37 = vsel %vm2220_vm6, %v2367_v32, %v2348_v30 }
 0x39c   :  { %v2381_v34 = vsel %vm2173_vm4, %v2380_v25, %v2376_v33 }
 0x39d   :  { %v2112_v31 = vpop.xlane.xlu1 %2111  ;;  %v2109_v35 = vpop.xlane.xlu0 %2108  ;;  %v2386_v36 = vsel %vm2180_vm5, %v2385_v29, %v2381_v34 }
 0x39e   :  { %v2388_v4 = vsel %vm2222_vm7, %v2386_v36, %v2387_v37  ;;  %v2165_v28 = vrot.slane %v2112_v31, %v3357_v2  ;;  %v2160_v44 = vrot.slane %v2109_v35, %v3355_v54 }
 0x39f   :  { %v2390_v62 = vsel %vm2225_vm8, %v2388_v4, 0.0 }
 0x3a0   :  { %2391 = vadd.xlane.f32.xlu0 %v2390_v62  ;;  %v2167_v50 = vsel %vm2166_vm3, %v2165_v28, %v2160_v44 }
 0x3a1   :  { %v2124_v38 = vpop.xlane.xlu1 %2123  ;;  %v2121_v40 = vpop.xlane.xlu0 %2120 }
 0x3a2   :  { %v2189_v45 = vrot.slane %v2124_v38, %v3357_v2  ;;  %v2185_v46 = vrot.slane %v2121_v40, %v3355_v54 }
 0x3a4   :  { %v2190_v51 = vsel %vm2166_vm3, %v2189_v45, %v2185_v46 }
 0x3a5   :  { %v2136_v41 = vpop.xlane.xlu1 %2135  ;;  %v2133_v42 = vpop.xlane.xlu0 %2132 }
 0x3a6   :  { %v2208_v52 = vrot.slane %v2136_v41, %v3357_v2  ;;  %v2204_v53 = vrot.slane %v2133_v42, %v3355_v54 }
 0x3a8   :  { %v2209_v54 = vsel %vm2166_vm3, %v2208_v52, %v2204_v53 }
 0x3a9   :  { %v2130_v39 = vpop.xlane.xlu1 %2129  ;;  %v2118_v43 = vpop.xlane.xlu0 %2117 }
 0x3aa   :  { %v2199_v55 = vrot.slane %v2130_v39, %v3363_v11  ;;  %v2179_v56 = vrot.slane %v2118_v43, %v3363_v11 }
 0x3ad   :  { %v2127_v21 = vpop.xlane.xlu1 %2126  ;;  %v2115_v47 = vpop.xlane.xlu0 %2114 }
 0x3ae   :  { %v2194_v48 = vrot.slane %v2127_v21, %v3359_v7  ;;  %v2172_v49 = vrot.slane %v2115_v47, %v3359_v7 }
 0x3b0   :  { %v2195_v57 = vsel %vm2173_vm4, %v2194_v48, %v2190_v51  ;;  %v2174_v58 = vsel %vm2173_vm4, %v2172_v49, %v2167_v50 }
 0x3b1   :  { %v2142_v59 = vpop.xlane.xlu1 %2141  ;;  %v2139_v60 = vpop.xlane.xlu0 %2138  ;;  %v2181_v0 = vsel %vm2180_vm5, %v2179_v56, %v2174_v58  ;;  %v2200_v1 = vsel %vm2180_vm5, %v2199_v55, %v2195_v57 }
 0x3b2   :  { %v2218_v61 = vrot.slane %v2142_v59, %v3363_v11  ;;  %v2213_v63 = vrot.slane %v2139_v60, %v3359_v7  ;;  %v2221_v6 = vsel %vm2220_vm6, %v2200_v1, %v2181_v0  ;;  %v2022_v7 = vld [vmem:[%s3427_s6] sm:$0x7] }
 0x3b4   :  { %v2214_v2 = vsel %vm2173_vm4, %v2213_v63, %v2209_v54 }
 0x3b5   :  { %v2219_v3 = vsel %vm2180_vm5, %v2218_v61, %v2214_v2 }
 0x3b6   :  { %v2223_v8 = vsel %vm2222_vm7, %v2219_v3, %v2221_v6 }
 0x3b7   :  { %v2226_v10 = vsel %vm2225_vm8, %v2223_v8, 0.0 }
 0x3b8   :  { %2227 = vadd.xlane.f32.xlu1 %v2226_v10 }
 0x42d   :  { %v2392_v11 = vpop.xlane.xlu0 %2391 }
 0x42e   :  { %v2393_v12 = vadd.f32 %v2392_v11, %v2022_v7 }
 0x430   :  { %v2543_v13 = vmul.f32 -1.442695, %v2393_v12 }
 0x432   :  { %2894 = vpow2.f32 %v2543_v13 }
 0x43c   :  { %v2895_v14 = vpop.eup %2894 }
 0x43d   :  { %v2397_v15 = vadd.f32 1.0, %v2895_v14 }
 0x43f   :  { %2896 = vrcp.f32 %v2397_v15 }
 0x445   :  { %v2228_v16 = vpop.xlane.xlu1 %2227 }
 0x446   :  { %v2229_v17 = vadd.f32 %v2228_v16, %v2022_v7 }
 0x448   :  { %v2538_v18 = vmul.f32 -1.442695, %v2229_v17 }
 0x449   :  { %v2897_v19 = vpop.eup %2896 }
 0x44a   :  { %2898 = vpow2.f32 %v2538_v18  ;;  %2401 = vrot.lane.b32.xlu0 %v2897_v19, %s2911_s14 }
 0x454   :  { %v2899_v20 = vpop.eup %2898 }
 0x455   :  { %v2233_v22 = vadd.f32 1.0, %v2899_v20 }
 0x457   :  { %2900 = vrcp.f32 %v2233_v22 }
 0x461   :  { %v2901_v9 = vpop.eup %2900 }
 0x462   :  { %2237 = vst.msk [vmem:[%s3428_s8] sm:$0x7] %vm2236_vm9, %v2901_v9 }
 0x4bc   :  { %v2402_v23 = vpop.permute.xlu0 %2401 }
 0x4bd   :  { %2405 = vst.msk [vmem:[%s3428_s8] sm:$0x7] %vm2404_vm10, %v2402_v23 }

</bundles_post_ra>
